<compile_context>
chip_gen: v5e
topology: v5e:2x2
jax: 0.10.0
libtpu: 0.0.40
codegen_flags: <defaults>
</compile_context>

<pallas_src>
import functools
import math

import jax
import jax.numpy as jnp
from jax.experimental import pallas as pl
from jax.experimental.pallas import tpu as pltpu


_MAX_ROW_TILE = 512                      # 512-row tiles ~85% of HBM roofline
_BLOCK_VMEM_LIMIT = 48 * 1024 * 1024     # headroom under v7x's 64 MiB physical VMEM


# ---------------------------------------------------------------------------
# In-kernel math helpers
# ---------------------------------------------------------------------------
def _erf(x):
    # Abramowitz&Stegun 7.1.26 rational approximation (|err| < 1.5e-7) keeps
    # exact-GELU semantics while guaranteeing Mosaic lowering (exp + rcp only).
    a1, a2, a3, a4, a5 = (0.254829592, -0.284496736, 1.421413741,
                          -1.453152027, 1.061405429)
    p = 0.3275911
    ax = jnp.abs(x)
    # EUP reciprocal: runs in its own VLIW slot, frees the VALU divide.
    t = pl.reciprocal(1.0 + p * ax, approx=True)
    poly = t * (a1 + t * (a2 + t * (a3 + t * (a4 + t * a5))))
    y = 1.0 - poly * jnp.exp(-ax * ax)
    return jnp.where(x >= 0, y, -y)


def _gelu(x):
    # nn.GELU() exact formulation: 0.5*x*(1+erf(x/sqrt(2)))
    return 0.5 * x * (1.0 + _erf(x * (1.0 / math.sqrt(2.0))))


def _ln(x, w, b, eps):
    mu = jnp.mean(x, axis=-1, keepdims=True)
    var = jnp.mean((x - mu) ** 2, axis=-1, keepdims=True)
    return (x - mu) * jax.lax.rsqrt(var + eps) * w + b


# ---------------------------------------------------------------------------
# Row-tiled matmul (+bias, optional fused LayerNorm epilogue)
# ---------------------------------------------------------------------------
def _matmul_bias_kernel(x_ref, w_ref, b_ref, lnw_ref, lnb_ref, o_ref,
                        *, eps, apply_ln):
    # x/w are bf16 (cast in the wrapper to halve DMA bytes), f32 accumulation.
    acc = jnp.dot(x_ref[...], w_ref[...],
                  preferred_element_type=jnp.float32) + b_ref[...]
    if apply_ln:
        # NOTE: on a partial final row tile the LN also runs over padded
        # garbage rows; harmless (row-wise math, padded rows never written).
        acc = _ln(acc, lnw_ref[...], lnb_ref[...], eps)
    o_ref[...] = acc.astype(o_ref.dtype)


def matmul_bias(x, w, b, ln_w=None, ln_b=None, eps=1e-6):
    m, k = x.shape
    n = w.shape[1]
    apply_ln = ln_w is not None
    if not apply_ln:
        ln_w = jnp.ones((n,), jnp.float32)
        ln_b = jnp.zeros((n,), jnp.float32)
    tm = m if m <= _MAX_ROW_TILE else _MAX_ROW_TILE
    return pl.pallas_call(
        functools.partial(_matmul_bias_kernel, eps=eps, apply_ln=apply_ln),
        grid=(pl.cdiv(m, tm),),
        in_specs=[
            pl.BlockSpec((tm, k), lambda i: (i, 0)),
            pl.BlockSpec((k, n), lambda i: (0, 0)),      # resident weight
            pl.BlockSpec((1, n), lambda i: (0, 0)),
            pl.BlockSpec((1, n), lambda i: (0, 0)),
            pl.BlockSpec((1, n), lambda i: (0, 0)),
        ],
        out_specs=pl.BlockSpec((tm, n), lambda i: (i, 0)),
        out_shape=jax.ShapeDtypeStruct((m, n), jnp.float32),
        compiler_params=pltpu.CompilerParams(dimension_semantics=("parallel",)),
    )(x.astype(jnp.bfloat16),                 # bf16 activation DMA
      w.astype(jnp.bfloat16), b.reshape(1, n),
      ln_w.reshape(1, n), ln_b.reshape(1, n))


# ---------------------------------------------------------------------------
# Row-tiled standalone LayerNorm (depth-0 stage fallback)
# ---------------------------------------------------------------------------
def _layernorm_kernel(x_ref, w_ref, b_ref, o_ref, *, eps):
    o_ref[...] = _ln(x_ref[...].astype(jnp.float32), w_ref[...], b_ref[...],
                     eps).astype(o_ref.dtype)


def layernorm(x2d, w, b, eps=1e-6):
    m, c = x2d.shape
    tm = m if m <= _MAX_ROW_TILE else _MAX_ROW_TILE
    return pl.pallas_call(
        functools.partial(_layernorm_kernel, eps=eps),
        grid=(pl.cdiv(m, tm),),
        in_specs=[pl.BlockSpec((tm, c), lambda i: (i, 0)),
                  pl.BlockSpec((1, c), lambda i: (0, 0)),
                  pl.BlockSpec((1, c), lambda i: (0, 0))],
        out_specs=pl.BlockSpec((tm, c), lambda i: (i, 0)),
        out_shape=jax.ShapeDtypeStruct((m, c), jnp.float32),
        compiler_params=pltpu.CompilerParams(dimension_semantics=("parallel",)),
    )(x2d, w.reshape(1, c), b.reshape(1, c))


# ---------------------------------------------------------------------------
# Fused ConvNeXt block:
#   7x7 depthwise conv -> LN -> Linear(4C) -> GELU -> Linear(C) -> gamma
#   -> residual (+ optional fused pre-downsample LayerNorm)
# Activations stream as dense (1, H*W, C) slabs (single load / single store).
# ---------------------------------------------------------------------------
def _convnext_block_kernel(x_ref, dww_ref, dwb_ref, lnw_ref, lnb_ref,
                           w1_ref, b1_ref, w2_ref, b2_ref, g_ref,
                           olnw_ref, olnb_ref, o_ref,
                           *, hh, ww, eps, apply_out_ln):
    c = o_ref.shape[-1]
    x2d = x_ref[0]                                     # (H*W, C) dense slab load

    # --- build the zero-haloed (H+6, W+6, C) input as a value ---------------
    # (no jnp.pad HBM round trip; W-axis concat is one sublane relayout,
    #  H-axis concat is a cheap leading-dim concat)
    x3 = x2d.reshape(hh, ww, c)
    zc = jnp.zeros((hh, 3, c), jnp.float32)
    zr = jnp.zeros((3, ww + 6, c), jnp.float32)
    xp = jnp.concatenate(
        [zr, jnp.concatenate([zc, x3, zc], axis=1), zr], axis=0)

    # --- 7x7 depthwise conv --------------------------------------------------
    # kh offsets index the untiled leading axis (free); kw shifts are realised
    # as 7 shifted slabs (one relayout each) instead of 49 sub-tile slices.
    # TODO(synk): pltpu.roll (XLU slot) for the kw shifts and bf16-VPU tap math
    # on v6e/v7x if the VALU/relayout path ever becomes the binding unit.
    w_all = dww_ref[...].astype(jnp.float32)           # (7, 7, C)
    acc = jnp.zeros((hh, ww, c), jnp.float32)
    for kw in range(7):
        xw = xp[:, kw:kw + ww, :]                      # (H+6, W, C)
        for kh in range(7):
            acc = acc + xw[kh:kh + hh] * w_all[kh:kh + 1, kw:kw + 1, :]
    y = (acc + dwb_ref[...]).reshape(hh * ww, c)       # dense (H*W, C) slab

    # --- LayerNorm -> Linear(4C) -> GELU -> Linear(C) -> gamma ---------------
    y = _ln(y, lnw_ref[...], lnb_ref[...], eps)
    h1 = jnp.dot(y.astype(jnp.bfloat16), w1_ref[...],
                 preferred_element_type=jnp.float32) + b1_ref[...]
    h1 = _gelu(h1)
    z = jnp.dot(h1.astype(jnp.bfloat16), w2_ref[...],
                preferred_element_type=jnp.float32) + b2_ref[...]
    z = z * g_ref[...]

    # --- residual (+ optional fused pre-downsample LN), ONE dense store ------
    out = x2d + z
    if apply_out_ln:
        out = _ln(out, olnw_ref[...], olnb_ref[...], eps)
    o_ref[0] = out.astype(o_ref.dtype)


def convnext_block(x_nhwc, blk, out_ln=None, eps=1e-6):
    n, h, w, c = x_nhwc.shape
    c4 = blk['w1'].shape[1]
    hw = h * w
    x2d = x_nhwc.reshape(n, hw, c)            # free reshape of contiguous dims
    apply_out_ln = out_ln is not None
    if apply_out_ln:
        olnw, olnb = out_ln
    else:
        olnw = jnp.ones((c,), jnp.float32)
        olnb = jnp.zeros((c,), jnp.float32)
    res2 = lambda i: (0, 0)                   # resident parameter blocks
    res3 = lambda i: (0, 0, 0)
    # TODO(synk): for very large H*W (e.g. 224/384-res stage 0 on v7x) add a
    # spatial row-tile grid axis with a 6-row halo so per-step VMEM is bounded.
    out = pl.pallas_call(
        functools.partial(_convnext_block_kernel, hh=h, ww=w, eps=eps,
                          apply_out_ln=apply_out_ln),
        grid=(n,),
        in_specs=[
            pl.BlockSpec((1, hw, c), lambda i: (i, 0, 0)),
            pl.BlockSpec((7, 7, c), res3),
            pl.BlockSpec((1, 1, c), res3),
            pl.BlockSpec((1, c), res2), pl.BlockSpec((1, c), res2),
            pl.BlockSpec((c, c4), res2), pl.BlockSpec((1, c4), res2),
            pl.BlockSpec((c4, c), res2), pl.BlockSpec((1, c), res2),
            pl.BlockSpec((1, c), res2),
            pl.BlockSpec((1, c), res2), pl.BlockSpec((1, c), res2),
        ],
        out_specs=pl.BlockSpec((1, hw, c), lambda i: (i, 0, 0)),
        out_shape=jax.ShapeDtypeStruct((n, hw, c), jnp.float32),
        compiler_params=pltpu.CompilerParams(
            dimension_semantics=("parallel",),
            vmem_limit_bytes=_BLOCK_VMEM_LIMIT),
    )(x2d, blk['dw_w'], blk['dw_b'].reshape(1, 1, c),
      blk['ln_w'].reshape(1, c), blk['ln_b'].reshape(1, c),
      blk['w1'].astype(jnp.bfloat16), blk['b1'].reshape(1, c4),
      blk['w2'].astype(jnp.bfloat16), blk['b2'].reshape(1, c),
      blk['gamma'].reshape(1, c),
      olnw.reshape(1, c), olnb.reshape(1, c))
    return out.reshape(n, h, w, c)            # free reshape back to NHWC


# ---------------------------------------------------------------------------
# Multi-head attention over bags (sequence padded to 8 sublanes, fused QKV)
# ---------------------------------------------------------------------------
def _mha_kernel(f_ref, m_ref, wqkv_ref, bqkv_ref, wo_ref, bo_ref, o_ref,
                *, num_heads):
    fb = f_ref[0]                               # (S, E) bf16
    s_len, e = fb.shape
    d = e // num_heads
    scale = 1.0 / math.sqrt(d)
    mask = m_ref[0]                             # (S, S) f32 additive key mask
    # fused q/k/v projection: one weight DMA, one (E, 3E) MXU pass
    qkv = jnp.dot(fb, wqkv_ref[...], preferred_element_type=jnp.float32) \
        + bqkv_ref[...]
    q = qkv[:, :e]
    k = qkv[:, e:2 * e]
    v = qkv[:, 2 * e:]
    lane = jax.lax.broadcasted_iota(jnp.int32, (1, e), 1)
    ctx = jnp.zeros((s_len, e), jnp.float32)
    # Per-head attention via lane masks: no head slicing / concat relayouts,
    # every operand stays (S sublanes x E lanes) dense. Padded query rows
    # produce finite but meaningless values; only the cls row is consumed.
    for h in range(num_heads):
        sel = ((lane >= h * d) & (lane < (h + 1) * d)).astype(jnp.float32)
        sc = jax.lax.dot_general(q * sel, k, (((1,), (1,)), ((), ())),
                                 preferred_element_type=jnp.float32) * scale
        sc = sc + mask
        sc = sc - jnp.max(sc, axis=-1, keepdims=True)
        p = jnp.exp(sc)
        p = p * pl.reciprocal(jnp.sum(p, axis=-1, keepdims=True), approx=True)
        ctx = ctx + jnp.dot(p, v * sel, preferred_element_type=jnp.float32)
    out = jnp.dot(ctx.astype(jnp.bfloat16), wo_ref[...],
                  preferred_element_type=jnp.float32) + bo_ref[...]
    o_ref[0] = out.astype(o_ref.dtype)


def mha(feature, add_mask, wq, wk, wv, bq, bk, bv, wo, bo, num_heads):
    b, s, e = feature.shape
    wqkv = jnp.concatenate([wq, wk, wv], axis=1).astype(jnp.bfloat16)  # (E,3E)
    bqkv = jnp.concatenate([bq, bk, bv]).reshape(1, 3 * e)
    return pl.pallas_call(
        functools.partial(_mha_kernel, num_heads=num_heads),
        grid=(b,),
        in_specs=[
            pl.BlockSpec((1, s, e), lambda i: (i, 0, 0)),
            pl.BlockSpec((1, s, s), lambda i: (i, 0, 0)),
            pl.BlockSpec((e, 3 * e), lambda i: (0, 0)),
            pl.BlockSpec((1, 3 * e), lambda i: (0, 0)),
            pl.BlockSpec((e, e), lambda i: (0, 0)),
            pl.BlockSpec((1, e), lambda i: (0, 0)),
        ],
        out_specs=pl.BlockSpec((1, s, e), lambda i: (i, 0, 0)),
        out_shape=jax.ShapeDtypeStruct((b, s, e), jnp.float32),
        compiler_params=pltpu.CompilerParams(dimension_semantics=("parallel",)),
    )(feature.astype(jnp.bfloat16), add_mask, wqkv, bqkv,
      wo.astype(jnp.bfloat16), bo.reshape(1, e))


# ---------------------------------------------------------------------------
# Fused per-image heads: final LayerNorm -> instance head & plane head
# (single pallas_call, three outputs)
# ---------------------------------------------------------------------------
def _head_kernel(f_ref, lnw_ref, lnb_ref, wi_ref, bi_ref, wp_ref, bp_ref,
                 feat_ref, inst_ref, plane_ref, *, eps):
    xf = _ln(f_ref[...].astype(jnp.float32), lnw_ref[...], lnb_ref[...], eps)
    feat_ref[...] = xf.astype(feat_ref.dtype)
    xb = xf.astype(jnp.bfloat16)
    inst_ref[...] = (jnp.dot(xb, wi_ref[...], preferred_element_type=jnp.float32)
                     + bi_ref[...]).astype(inst_ref.dtype)
    plane_ref[...] = (jnp.dot(xb, wp_ref[...], preferred_element_type=jnp.float32)
                      + bp_ref[...]).astype(plane_ref.dtype)


def heads(avg_features, ln_w, ln_b, inst_w, inst_b, plane_w, plane_b, eps=1e-6):
    m, c = avg_features.shape
    ni = inst_w.shape[1]
    npl = plane_w.shape[1]
    tm = m if m <= _MAX_ROW_TILE else _MAX_ROW_TILE
    res = lambda i: (0, 0)
    return pl.pallas_call(
        functools.partial(_head_kernel, eps=eps),
        grid=(pl.cdiv(m, tm),),
        in_specs=[pl.BlockSpec((tm, c), lambda i: (i, 0)),
                  pl.BlockSpec((1, c), res), pl.BlockSpec((1, c), res),
                  pl.BlockSpec((c, ni), res), pl.BlockSpec((1, ni), res),
                  pl.BlockSpec((c, npl), res), pl.BlockSpec((1, npl), res)],
        out_specs=(pl.BlockSpec((tm, c), lambda i: (i, 0)),
                   pl.BlockSpec((tm, ni), lambda i: (i, 0)),
                   pl.BlockSpec((tm, npl), lambda i: (i, 0))),
        out_shape=(jax.ShapeDtypeStruct((m, c), jnp.float32),
                   jax.ShapeDtypeStruct((m, ni), jnp.float32),
                   jax.ShapeDtypeStruct((m, npl), jnp.float32)),
        compiler_params=pltpu.CompilerParams(dimension_semantics=("parallel",)),
    )(avg_features, ln_w.reshape(1, c), ln_b.reshape(1, c),
      inst_w.astype(jnp.bfloat16), inst_b.reshape(1, ni),
      plane_w.astype(jnp.bfloat16), plane_b.reshape(1, npl))


# ---------------------------------------------------------------------------
# Cosine classifier (kept f32 for normalization precision; tiny)
# ---------------------------------------------------------------------------
def _cosine_cls_kernel(f_ref, w_ref, o_ref, *, temp):
    f = f_ref[...].astype(jnp.float32)
    w = w_ref[...].astype(jnp.float32)
    fn = f / jnp.maximum(jnp.sqrt(jnp.sum(f * f, axis=1, keepdims=True)), 1e-12)
    wn = w / jnp.maximum(jnp.sqrt(jnp.sum(w * w, axis=0, keepdims=True)), 1e-12)
    o_ref[...] = (temp * jnp.dot(fn, wn, preferred_element_type=jnp.float32)
                  ).astype(o_ref.dtype)


def cosine_classifier(feature, weight, temp):
    m, k = feature.shape
    n = weight.shape[1]
    tm = m if m <= _MAX_ROW_TILE else _MAX_ROW_TILE
    return pl.pallas_call(
        functools.partial(_cosine_cls_kernel, temp=float(temp)),
        grid=(pl.cdiv(m, tm),),
        in_specs=[pl.BlockSpec((tm, k), lambda i: (i, 0)),
                  pl.BlockSpec((k, n), lambda i: (0, 0))],
        out_specs=pl.BlockSpec((tm, n), lambda i: (i, 0)),
        out_shape=jax.ShapeDtypeStruct((m, n), jnp.float32),
        compiler_params=pltpu.CompilerParams(dimension_semantics=("parallel",)),
    )(feature, weight)


# ---------------------------------------------------------------------------
# JAX glue: patchification for strided convs, parameters, full forward
# ---------------------------------------------------------------------------
def strided_conv(x_nhwc, w_flat, b, k, ln_w=None, ln_b=None):
    """k x k conv with stride k == patchify + Pallas matmul (+ optional LN)."""
    # TODO(synk): patchify still materializes once via XLA reshape/transpose;
    # could be folded into the matmul kernel via strided index_map loads.
    n, h, wdt, c = x_nhwc.shape
    ho, wo = h // k, wdt // k
    patches = (x_nhwc.reshape(n, ho, k, wo, k, c)
               .transpose(0, 1, 3, 2, 4, 5)
               .reshape(n * ho * wo, k * k * c))
    out = matmul_bias(patches, w_flat, b, ln_w=ln_w, ln_b=ln_b)
    return out.reshape(n, ho, wo, -1)


def _trunc_normal(key, shape, std=0.2):
    return std * jax.random.truncated_normal(key, -2.0, 2.0, shape, jnp.float32)


def init_convnext_params(key, in_chans, dims, depths, num_classes,
                         num_img_classes, num_planes,
                         layer_scale_init_value=1e-6):
    params = {}
    keys = iter(jax.random.split(key, 256))
    bf16 = jnp.bfloat16     # MXU matmul weights stored bf16 (f32 accumulation)
    params['stem_w'] = _trunc_normal(next(keys), (4 * 4 * in_chans, dims[0])).astype(bf16)
    params['stem_b'] = jnp.zeros((dims[0],), jnp.float32)
    params['stem_ln_w'] = jnp.ones((dims[0],), jnp.float32)
    params['stem_ln_b'] = jnp.zeros((dims[0],), jnp.float32)
    params['down'] = []
    for i in range(3):
        params['down'].append(dict(
            ln_w=jnp.ones((dims[i],), jnp.float32),
            ln_b=jnp.zeros((dims[i],), jnp.float32),
            w=_trunc_normal(next(keys), (2 * 2 * dims[i], dims[i + 1])).astype(bf16),
            b=jnp.zeros((dims[i + 1],), jnp.float32)))
    params['stages'] = []
    for i in range(4):
        blocks = []
        d = dims[i]
        for _ in range(depths[i]):
            blocks.append(dict(
                dw_w=_trunc_normal(next(keys), (7, 7, d)),
                dw_b=jnp.zeros((d,), jnp.float32),
                ln_w=jnp.ones((d,), jnp.float32),
                ln_b=jnp.zeros((d,), jnp.float32),
                w1=_trunc_normal(next(keys), (d, 4 * d)).astype(bf16),
                b1=jnp.zeros((4 * d,), jnp.float32),
                w2=_trunc_normal(next(keys), (4 * d, d)).astype(bf16),
                b2=jnp.zeros((d,), jnp.float32),
                gamma=layer_scale_init_value * jnp.ones((d,), jnp.float32)))
        params['stages'].append(blocks)
    d = dims[-1]
    params['norm_w'] = jnp.ones((d,), jnp.float32)
    params['norm_b'] = jnp.zeros((d,), jnp.float32)
    params['inst_w'] = _trunc_normal(next(keys), (d, num_img_classes)).astype(bf16)
    params['inst_b'] = jnp.zeros((num_img_classes,), jnp.float32)
    params['plane_w'] = _trunc_normal(next(keys), (d, num_planes)).astype(bf16)
    params['plane_b'] = jnp.zeros((num_planes,), jnp.float32)
    params['cls_token'] = jax.random.normal(next(keys), (1, d), jnp.float32)
    params['attn'] = dict(
        wq=_trunc_normal(next(keys), (d, d)).astype(bf16), bq=jnp.zeros((d,), jnp.float32),
        wk=_trunc_normal(next(keys), (d, d)).astype(bf16), bk=jnp.zeros((d,), jnp.float32),
        wv=_trunc_normal(next(keys), (d, d)).astype(bf16), bv=jnp.zeros((d,), jnp.float32),
        wo=_trunc_normal(next(keys), (d, d)).astype(bf16), bo=jnp.zeros((d,), jnp.float32))
    params['disease_w'] = _trunc_normal(next(keys), (d, num_classes))
    params['cos_temp'] = 8.0
    return params


def convnext_forward(params, x_nchw, bag_length, num_heads=8, max_length=6):
    """Eval-mode ConvNeXt forward. bag_length is a static python tuple/list."""
    x = jnp.transpose(x_nchw, (0, 2, 3, 1)).astype(jnp.float32)   # NCHW -> NHWC

    # stem: conv(4,4,s4) with the channels-first LayerNorm fused as epilogue
    x = strided_conv(x, params['stem_w'], params['stem_b'], 4,
                     ln_w=params['stem_ln_w'], ln_b=params['stem_ln_b'])

    for i in range(4):
        if i > 0:
            # pre-downsample LayerNorm was fused into the previous stage's
            # last block epilogue; only the 2x2/s2 conv remains here.
            p = params['down'][i - 1]
            x = strided_conv(x, p['w'], p['b'], 2)
        blocks = params['stages'][i]
        for bi, blk in enumerate(blocks):
            fuse_ln = (i < 3) and (bi == len(blocks) - 1)
            out_ln = ((params['down'][i]['ln_w'], params['down'][i]['ln_b'])
                      if fuse_ln else None)
            x = convnext_block(x, blk, out_ln=out_ln)
        if i < 3 and not blocks:            # depth-0 stage fallback
            n, h, w, c = x.shape
            x = layernorm(x.reshape(-1, c), params['down'][i]['ln_w'],
                          params['down'][i]['ln_b']).reshape(n, h, w, c)

    # global average pool (tiny reduction, left to XLA) then fused:
    # final LayerNorm + instance head + plane head in one pallas_call
    avg_features = jnp.mean(x, axis=(1, 2))                        # (bl, C)
    x_features, instance_outputs, plane_outputs = heads(
        avg_features, params['norm_w'], params['norm_b'],
        params['inst_w'], params['inst_b'],
        params['plane_w'], params['plane_b'])

    # patient-level: pad each bag to max_length, prepend cls token, pad the
    # sequence to a multiple of 8 sublanes and fold all padding into the mask
    dim = x_features.shape[-1]
    s_pad = ((max_length + 1 + 7) // 8) * 8
    feats, masks = [], []
    off = 0
    for length in bag_length:
        f = x_features[off:off + length]
        off += length
        pad_rows = s_pad - 1 - length
        feats.append(jnp.concatenate(
            [params['cls_token'], f, jnp.zeros((pad_rows, dim), jnp.float32)],
            axis=0))
        m = jnp.concatenate([jnp.zeros((1 + length,), jnp.float32),
                             jnp.full((pad_rows,), -1e30, jnp.float32)])
        masks.append(jnp.broadcast_to(m, (s_pad, s_pad)))
    feature = jnp.stack(feats)            # (num_bags, s_pad, dim)
    attn_mask = jnp.stack(masks)          # (num_bags, s_pad, s_pad) additive
    a = params['attn']
    attended = mha(feature, attn_mask, a['wq'], a['wk'], a['wv'],
                   a['bq'], a['bk'], a['bv'], a['wo'], a['bo'], num_heads)
    bag_feature = attended[:, 0]          # cls-token output
    disease_outputs = cosine_classifier(bag_feature, params['disease_w'],
                                        params['cos_temp'])
    return disease_outputs, instance_outputs, plane_outputs


if __name__ == "__main__":
    key = jax.random.PRNGKey(0)
    in_chans = 3
    dims = [16, 32, 64, 128]       # final dim lane-dense (128) and /8 heads
    depths = [1, 1, 1, 1]
    num_classes, num_img_classes, num_planes = 7, 2, 5
    bag_length = (2, 3)            # two "patients", 2+3 images
    bl = sum(bag_length)
    height = width = 32            # /4 stem then /2 x3 -> 8,4,2,1

    k_param, k_input = jax.random.split(key)
    params = init_convnext_params(k_param, in_chans, dims, depths,
                                  num_classes, num_img_classes, num_planes)
    x = jax.random.normal(k_input, (bl, in_chans, height, width), jnp.float32)

    disease, inst, plane = convnext_forward(params, x, bag_length)
    jax.block_until_ready((disease, inst, plane))

    assert disease.shape == (len(bag_length), num_classes)
    assert inst.shape == (bl, num_img_classes)
    assert plane.shape == (bl, num_planes)
    assert bool(jnp.isfinite(disease).all() & jnp.isfinite(inst).all()
                & jnp.isfinite(plane).all())
    print("KERNEL_OK")
</pallas_src>

<mosaic_0001>
module attributes {stable_mosaic.version = 11 : i64} {
  func.func @_matmul_bias_kernel(%arg0: i32, %arg1: memref<320x48xbf16, #tpu.memory_space<vmem>>, %arg2: memref<48x16xbf16, #tpu.memory_space<vmem>>, %arg3: memref<1x16xf32, #tpu.memory_space<vmem>>, %arg4: memref<1x16xf32, #tpu.memory_space<vmem>>, %arg5: memref<1x16xf32, #tpu.memory_space<vmem>>, %arg6: memref<320x16xf32, #tpu.memory_space<vmem>>) attributes {dimension_semantics = [#tpu.dimension_semantics<parallel>], iteration_bounds = array<i64: 1>, scalar_prefetch = 0 : i64, scratch_operands = 0 : i64, tpu.core_type = #tpu.core_type<tc>, window_params = [{transform_indices = @transform_0, window_bounds = array<i64: 320, 48>}, {pipeline_mode = #tpu.pipeline_mode<synchronous>, transform_indices = @transform_1, window_bounds = array<i64: 48, 16>}, {pipeline_mode = #tpu.pipeline_mode<synchronous>, transform_indices = @transform_2, window_bounds = array<i64: 1, 16>}, {pipeline_mode = #tpu.pipeline_mode<synchronous>, transform_indices = @transform_3, window_bounds = array<i64: 1, 16>}, {pipeline_mode = #tpu.pipeline_mode<synchronous>, transform_indices = @transform_4, window_bounds = array<i64: 1, 16>}, {transform_indices = @transform_5, window_bounds = array<i64: 320, 16>}]} {
    %c0 = arith.constant 0 : index
    %c0_0 = arith.constant 0 : index
    %0 = vector.load %arg1[%c0, %c0_0] : memref<320x48xbf16, #tpu.memory_space<vmem>>, vector<320x48xbf16>
    %c0_1 = arith.constant 0 : index
    %c0_2 = arith.constant 0 : index
    %1 = vector.load %arg2[%c0_1, %c0_2] : memref<48x16xbf16, #tpu.memory_space<vmem>>, vector<48x16xbf16>
    %cst = arith.constant dense<0.000000e+00> : vector<320x16xf32>
    %2 = tpu.matmul %0, %1, %cst {dimension_numbers = #tpu.dot_dimension_numbers<[1], [0], [0], [1], [0, 0, 1, 1], [], []>} : vector<320x48xbf16>, vector<48x16xbf16>, vector<320x16xf32> -> vector<320x16xf32>
    %c0_3 = arith.constant 0 : index
    %c0_4 = arith.constant 0 : index
    %3 = vector.load %arg3[%c0_3, %c0_4] : memref<1x16xf32, #tpu.memory_space<vmem>>, vector<1x16xf32>
    %4 = vector.broadcast %3 : vector<1x16xf32> to vector<320x16xf32>
    %5 = arith.addf %2, %4 : vector<320x16xf32>
    %c0_5 = arith.constant 0 : index
    %c0_6 = arith.constant 0 : index
    %6 = vector.load %arg4[%c0_5, %c0_6] : memref<1x16xf32, #tpu.memory_space<vmem>>, vector<1x16xf32>
    %c0_7 = arith.constant 0 : index
    %c0_8 = arith.constant 0 : index
    %7 = vector.load %arg5[%c0_7, %c0_8] : memref<1x16xf32, #tpu.memory_space<vmem>>, vector<1x16xf32>
    %cst_9 = arith.constant dense<0.000000e+00> : vector<320xf32>
    %8 = vector.multi_reduction <add>, %5, %cst_9 [1] : vector<320x16xf32> to vector<320xf32>
    %9 = vector.shape_cast %8 : vector<320xf32> to vector<320x1xf32>
    %cst_10 = arith.constant 1.600000e+01 : f32
    %10 = vector.broadcast %cst_10 : f32 to vector<320x1xf32>
    %11 = arith.divf %9, %10 : vector<320x1xf32>
    %12 = vector.broadcast %11 : vector<320x1xf32> to vector<320x16xf32>
    %13 = arith.subf %5, %12 : vector<320x16xf32>
    %14 = arith.mulf %13, %13 : vector<320x16xf32>
    %cst_11 = arith.constant dense<0.000000e+00> : vector<320xf32>
    %15 = vector.multi_reduction <add>, %14, %cst_11 [1] : vector<320x16xf32> to vector<320xf32>
    %16 = vector.shape_cast %15 : vector<320xf32> to vector<320x1xf32>
    %cst_12 = arith.constant 1.600000e+01 : f32
    %17 = vector.broadcast %cst_12 : f32 to vector<320x1xf32>
    %18 = arith.divf %16, %17 : vector<320x1xf32>
    %19 = vector.broadcast %11 : vector<320x1xf32> to vector<320x16xf32>
    %20 = arith.subf %5, %19 : vector<320x16xf32>
    %cst_13 = arith.constant 9.99999997E-7 : f32
    %21 = vector.broadcast %cst_13 : f32 to vector<320x1xf32>
    %22 = arith.addf %18, %21 : vector<320x1xf32>
    %23 = math.rsqrt %22 : vector<320x1xf32>
    %24 = vector.broadcast %23 : vector<320x1xf32> to vector<320x16xf32>
    %25 = arith.mulf %20, %24 : vector<320x16xf32>
    %26 = vector.broadcast %6 : vector<1x16xf32> to vector<320x16xf32>
    %27 = arith.mulf %25, %26 : vector<320x16xf32>
    %28 = vector.broadcast %7 : vector<1x16xf32> to vector<320x16xf32>
    %29 = arith.addf %27, %28 : vector<320x16xf32>
    %c0_14 = arith.constant 0 : index
    %c0_15 = arith.constant 0 : index
    %30 = vector.load %arg6[%c0_14, %c0_15] : memref<320x16xf32, #tpu.memory_space<vmem>>, vector<320x16xf32>
    tpu.vector_store %arg6[%c0_14, %c0_15], %29 {strides = array<i32>} : memref<320x16xf32, #tpu.memory_space<vmem>>, vector<320x16xf32>,
    return
  }
  func.func @transform_0(%arg0: i32) -> (i32, i32) {
    %c0_i32 = arith.constant 0 : i32
    %c0_i32_0 = arith.constant 0 : i32
    return %arg0, %c0_i32 : i32, i32
  }
  func.func @transform_1(%arg0: i32) -> (i32, i32) {
    %c0_i32 = arith.constant 0 : i32
    %c0_i32_0 = arith.constant 0 : i32
    %c0_i32_1 = arith.constant 0 : i32
    return %c0_i32, %c0_i32_0 : i32, i32
  }
  func.func @transform_2(%arg0: i32) -> (i32, i32) {
    %c0_i32 = arith.constant 0 : i32
    %c0_i32_0 = arith.constant 0 : i32
    %c0_i32_1 = arith.constant 0 : i32
    return %c0_i32, %c0_i32_0 : i32, i32
  }
  func.func @transform_3(%arg0: i32) -> (i32, i32) {
    %c0_i32 = arith.constant 0 : i32
    %c0_i32_0 = arith.constant 0 : i32
    %c0_i32_1 = arith.constant 0 : i32
    return %c0_i32, %c0_i32_0 : i32, i32
  }
  func.func @transform_4(%arg0: i32) -> (i32, i32) {
    %c0_i32 = arith.constant 0 : i32
    %c0_i32_0 = arith.constant 0 : i32
    %c0_i32_1 = arith.constant 0 : i32
    return %c0_i32, %c0_i32_0 : i32, i32
  }
  func.func @transform_5(%arg0: i32) -> (i32, i32) {
    %c0_i32 = arith.constant 0 : i32
    %c0_i32_0 = arith.constant 0 : i32
    return %arg0, %c0_i32 : i32, i32
  }
}

</mosaic_0001>

<bundles_post_ra>
// kernel: tpu_custom_call.1
= control target key start
LH: loop header
LB: loop body
LE: loop exit
PB: predicated region body
PF: predicated region fallthrough
CT: control target
= control target key end

     0   :  { %vm189_vm0 = vcmask 392192   ;;  %vm361_vm1 = vcmask 130048   ;;  %s2977_s1 = inlined_call_operand.vmem [shape: bf16[48,16], index: 1, kind: input, shape index: {}]   ;;  %s2978_s2 = inlined_call_operand.vmem [shape: f32[1,16], index: 2, kind: input, shape index: {}]   ;;  %s2979_s0 = inlined_call_operand.vmem [shape: bf16[320,48], index: 0, kind: input, shape index: {}]   ;;  %s2980_s3 = inlined_call_operand.vmem [shape: f32[1,16], index: 3, kind: input, shape index: {}]   ;;  %s2981_s4 = inlined_call_operand.vmem [shape: f32[1,16], index: 4, kind: input, shape index: {}]   ;;  %s2982_s5 = inlined_call_operand.vmem [shape: f32[320,16], index: 5, kind: output, shape index: {}]  }
   0x1   :  { %v1513_v0 = vld [vmem:[%s2977_s1 + $0x10] sm:$0xff]  ;;  %v1512_v1 = vld [vmem:[%s2977_s1 + $0x8] sm:$0xff]  ;;  %v1511_v2 = vld [vmem:[%s2977_s1] sm:$0xff] }
   0x2   :  { %255 = vmatpush.bf16.msra.mxu0 %v1513_v0  ;;  %1514 = vmatpush.bf16.msra.mxu1 %v1513_v0  ;;  %v1491_v3 = vld [vmem:[%s2979_s0] sm:$0xff]  ;;  %v1496_v4 = vld [vmem:[%s2979_s0 + $0x28] sm:$0xff]  ;;  %v1501_v5 = vld [vmem:[%s2979_s0 + $0x50] sm:$0xff] }
   0x3   :  { %1515 = vmatpush.bf16.msra.mxu2 %v1513_v0  ;;  %1516 = vmatpush.bf16.msra.mxu3 %v1513_v0  ;;  %v1506_v6 = vld [vmem:[%s2979_s0 + $0x78] sm:$0xff]  ;;  %v1492_v7 = vld [vmem:[%s2979_s0 + $0x8] sm:$0xff]  ;;  %v1497_v8 = vld [vmem:[%s2979_s0 + $0x30] sm:$0xff] }
   0x4   :  { %v1502_v9 = vld [vmem:[%s2979_s0 + $0x58] sm:$0xff]  ;;  %v1507_v10 = vld [vmem:[%s2979_s0 + $0x80] sm:$0xff]  ;;  %v1493_v11 = vld [vmem:[%s2979_s0 + $0x10] sm:$0xff] }
   0x5   :  { %v1498_v12 = vld [vmem:[%s2979_s0 + $0x38] sm:$0xff]  ;;  %v1503_v13 = vld [vmem:[%s2979_s0 + $0x60] sm:$0xff]  ;;  %v1508_v14 = vld [vmem:[%s2979_s0 + $0x88] sm:$0xff] }
   0x6   :  { %256 = vmatpush.bf16.msra.mxu0 %v1512_v1  ;;  %1517 = vmatpush.bf16.msra.mxu1 %v1512_v1  ;;  %v1494_v15 = vld [vmem:[%s2979_s0 + $0x18] sm:$0xff]  ;;  %v1499_v16 = vld [vmem:[%s2979_s0 + $0x40] sm:$0xff]  ;;  %v1504_v17 = vld [vmem:[%s2979_s0 + $0x68] sm:$0xff] }
   0x7   :  { %1518 = vmatpush.bf16.msra.mxu2 %v1512_v1  ;;  %1519 = vmatpush.bf16.msra.mxu3 %v1512_v1  ;;  %v1509_v18 = vld [vmem:[%s2979_s0 + $0x90] sm:$0xff]  ;;  %v1495_v19 = vld [vmem:[%s2979_s0 + $0x20] sm:$0xff]  ;;  %v1500_v20 = vld [vmem:[%s2979_s0 + $0x48] sm:$0xff] }
   0x8   :  { %v1505_v21 = vld [vmem:[%s2979_s0 + $0x70] sm:$0xff]  ;;  %v1510_v22 = vld [vmem:[%s2979_s0 + $0x98] sm:$0xff]  ;;  %v1734_v23 = vld [vmem:[%s2978_s2] ss:$0 sm:$0xff] }
   0xa   :  { %257 = vmatpush.bf16.msra.mxu0 %v1511_v2  ;;  %1520 = vmatpush.bf16.msra.mxu1 %v1511_v2 }
   0xb   :  { %1521 = vmatpush.bf16.msra.mxu2 %v1511_v2  ;;  %1522 = vmatpush.bf16.msra.mxu3 %v1511_v2 }
   0xd   :  { %1471 = vmatmul.msk.bf16.vlgmr.msra.gmra.mxu0 %vm189_vm0, %v1491_v3  ;;  %1476 = vmatmul.msk.bf16.vlgmr.msra.gmra.mxu1 %vm189_vm0, %v1496_v4 }
   0xe   :  { %1481 = vmatmul.msk.bf16.vlgmr.msra.gmra.mxu2 %vm189_vm0, %v1501_v5  ;;  %1486 = vmatmul.msk.bf16.vlgmr.msra.gmra.mxu3 %vm189_vm0, %v1506_v6 }
  0x1d   :  { %1472 = vmatmul.msk.bf16.gmra.mxu0 %vm189_vm0, %v1492_v7  ;;  %1477 = vmatmul.msk.bf16.gmra.mxu1 %vm189_vm0, %v1497_v8 }
  0x1e   :  { %1482 = vmatmul.msk.bf16.gmra.mxu2 %vm189_vm0, %v1502_v9  ;;  %1487 = vmatmul.msk.bf16.gmra.mxu3 %vm189_vm0, %v1507_v10 }
  0x2d   :  { %1473 = vmatmul.msk.bf16.gmra.mxu0 %vm189_vm0, %v1493_v11  ;;  %1478 = vmatmul.msk.bf16.gmra.mxu1 %vm189_vm0, %v1498_v12 }
  0x2e   :  { %1483 = vmatmul.msk.bf16.gmra.mxu2 %vm189_vm0, %v1503_v13  ;;  %1488 = vmatmul.msk.bf16.gmra.mxu3 %vm189_vm0, %v1508_v14 }
  0x3d   :  { %1474 = vmatmul.msk.bf16.gmra.mxu0 %vm189_vm0, %v1494_v15  ;;  %1479 = vmatmul.msk.bf16.gmra.mxu1 %vm189_vm0, %v1499_v16 }
  0x3e   :  { %1484 = vmatmul.msk.bf16.gmra.mxu2 %vm189_vm0, %v1504_v17  ;;  %1489 = vmatmul.msk.bf16.gmra.mxu3 %vm189_vm0, %v1509_v18 }
  0x4d   :  { %1475 = vmatmul.msk.bf16.gmra.mxu0 %vm189_vm0, %v1495_v19  ;;  %1480 = vmatmul.msk.bf16.gmra.mxu1 %vm189_vm0, %v1500_v20 }
  0x4e   :  { %1485 = vmatmul.msk.bf16.gmra.mxu2 %vm189_vm0, %v1505_v21  ;;  %1490 = vmatmul.msk.bf16.gmra.mxu3 %vm189_vm0, %v1510_v22 }
  0x8a   :  { %v259_v24 = vpop.f32.mrf.mxu0  ;;  %v284_v25 = vpop.f32.mrf.mxu1 }
  0x8b   :  { %v1737_v26 = vadd.f32 %v1734_v23, %v259_v24  ;;  %v1740_v27 = vadd.f32 %v1734_v23, %v284_v25 }
  0x8d   :  { %v392_v28 = vsel %vm361_vm1, %v1740_v27, 0.0  ;;  %v362_v29 = vsel %vm361_vm1, %v1737_v26, 0.0 }
  0x8e   :  { %393 = vadd.xlane.f32.xlu1 %v392_v28  ;;  %363 = vadd.xlane.f32.xlu0 %v362_v29 }
  0x91   :  { %v309_v30 = vpop.f32.mrf.mxu2  ;;  %v334_v31 = vpop.f32.mrf.mxu3 }
  0x92   :  { %v1747_v32 = vadd.f32 %v1734_v23, %v309_v30  ;;  %v1750_v33 = vadd.f32 %v1734_v23, %v334_v31  ;;  %v261_v34 = vpop.f32.mrf.mxu0  ;;  %v286_v37 = vpop.f32.mrf.mxu1 }
  0x93   :  { %v1757_v38 = vadd.f32 %v1734_v23, %v286_v37  ;;  %v1760_v39 = vadd.f32 %v1734_v23, %v261_v34 }
  0x94   :  { %v422_v35 = vsel %vm361_vm1, %v1747_v32, 0.0  ;;  %v452_v36 = vsel %vm361_vm1, %v1750_v33, 0.0 }
  0x95   :  { %423 = vadd.xlane.f32.xlu2 %v422_v35  ;;  %v395_v44 = vsel %vm361_vm1, %v1757_v38, 0.0  ;;  %v365_v46 = vsel %vm361_vm1, %v1760_v39, 0.0 }
  0x96   :  { %453 = vadd.xlane.f32.xlu0 %v452_v36 }
  0x99   :  { %v311_v40 = vpop.f32.mrf.mxu2  ;;  %v336_v41 = vpop.f32.mrf.mxu3 }
  0x9a   :  { %v1763_v42 = vadd.f32 %v1734_v23, %v336_v41  ;;  %v264_v43 = vpop.f32.mrf.mxu0  ;;  %v289_v48 = vpop.f32.mrf.mxu1  ;;  %v1775_v49 = vadd.f32 %v1734_v23, %v311_v40 }
  0x9b   :  { %v1772_v47 = vadd.f32 %v1734_v23, %v264_v43  ;;  %v1787_v57 = vadd.f32 %v1734_v23, %v289_v48 }
  0x9c   :  { %v455_v45 = vsel %vm361_vm1, %v1763_v42, 0.0  ;;  %v425_v56 = vsel %vm361_vm1, %v1775_v49, 0.0 }
  0x9d   :  { %396 = vadd.xlane.f32.xlu2 %v395_v44  ;;  %456 = vadd.xlane.f32.xlu1 %v455_v45  ;;  %v368_v53 = vsel %vm361_vm1, %v1772_v47, 0.0  ;;  %v398_v62 = vsel %vm361_vm1, %v1787_v57, 0.0 }
  0x9e   :  { %366 = vadd.xlane.f32.xlu0 %v365_v46 }
  0xa1   :  { %v314_v50 = vpop.f32.mrf.mxu2  ;;  %v339_v51 = vpop.f32.mrf.mxu3 }
  0xa2   :  { %v1778_v52 = vadd.f32 %v1734_v23, %v339_v51  ;;  %v266_v54 = vpop.f32.mrf.mxu0  ;;  %v1790_v58 = vadd.f32 %v1734_v23, %v314_v50  ;;  %v291_v61 = vpop.f32.mrf.mxu1 }
  0xa3   :  { %v1805_v4 = vadd.f32 %v1734_v23, %v266_v54  ;;  %v1823_v13 = vadd.f32 %v1734_v23, %v291_v61 }
  0xa4   :  { %v458_v55 = vsel %vm361_vm1, %v1778_v52, 0.0  ;;  %v428_v0 = vsel %vm361_vm1, %v1790_v58, 0.0 }
  0xa5   :  { %459 = vadd.xlane.f32.xlu2 %v458_v55  ;;  %369 = vadd.xlane.f32.xlu1 %v368_v53  ;;  %v371_v8 = vsel %vm361_vm1, %v1805_v4, 0.0  ;;  %v401_v18 = vsel %vm361_vm1, %v1823_v13, 0.0 }
  0xa6   :  { %426 = vadd.xlane.f32.xlu0 %v425_v56 }
  0xa9   :  { %v316_v59 = vpop.f32.mrf.mxu2  ;;  %v341_v2 = vpop.f32.mrf.mxu3 }
  0xaa   :  { %v1793_v60 = vadd.f32 %v1734_v23, %v316_v59  ;;  %v269_v1 = vpop.f32.mrf.mxu0  ;;  %v1808_v5 = vadd.f32 %v1734_v23, %v341_v2  ;;  %v294_v7 = vpop.f32.mrf.mxu1 }
  0xab   :  { %v1802_v3 = vadd.f32 %v1734_v23, %v269_v1  ;;  %v1817_v11 = vadd.f32 %v1734_v23, %v294_v7 }
  0xac   :  { %v431_v63 = vsel %vm361_vm1, %v1793_v60, 0.0  ;;  %v461_v10 = vsel %vm361_vm1, %v1808_v5, 0.0 }
  0xad   :  { %432 = vadd.xlane.f32.xlu2 %v431_v63  ;;  %429 = vadd.xlane.f32.xlu1 %v428_v0  ;;  %v374_v6 = vsel %vm361_vm1, %v1802_v3, 0.0  ;;  %v404_v15 = vsel %vm361_vm1, %v1817_v11, 0.0 }
  0xae   :  { %399 = vadd.xlane.f32.xlu0 %v398_v62 }
  0xb1   :  { %v319_v9 = vpop.f32.mrf.mxu2  ;;  %v344_v14 = vpop.f32.mrf.mxu3 }
  0xb2   :  { %v1820_v12 = vadd.f32 %v1734_v23, %v319_v9  ;;  %v271_v17 = vpop.f32.mrf.mxu0  ;;  %v296_v19 = vpop.f32.mrf.mxu1  ;;  %v1832_v20 = vadd.f32 %v1734_v23, %v344_v14 }
  0xb3   :  { %v1835_v21 = vadd.f32 %v1734_v23, %v271_v17  ;;  %v1838_v22 = vadd.f32 %v1734_v23, %v296_v19 }
  0xb4   :  { %v434_v16 = vsel %vm361_vm1, %v1820_v12, 0.0  ;;  %v464_v25 = vsel %vm361_vm1, %v1832_v20, 0.0 }
  0xb5   :  { %375 = vadd.xlane.f32.xlu2 %v374_v6  ;;  %372 = vadd.xlane.f32.xlu1 %v371_v8  ;;  %v377_v29 = vsel %vm361_vm1, %v1835_v21, 0.0  ;;  %v407_v31 = vsel %vm361_vm1, %v1838_v22, 0.0 }
  0xb6   :  { %462 = vadd.xlane.f32.xlu0 %v461_v10 }
  0xb9   :  { %v321_v24 = vpop.f32.mrf.mxu2  ;;  %v346_v28 = vpop.f32.mrf.mxu3 }
  0xba   :  { %v274_v30 = vpop.f32.mrf.mxu0  ;;  %v1850_v35 = vadd.f32 %v1734_v23, %v321_v24  ;;  %v1853_v36 = vadd.f32 %v1734_v23, %v346_v28  ;;  %v299_v37 = vpop.f32.mrf.mxu1 }
  0xbb   :  { %v1847_v34 = vadd.f32 %v1734_v23, %v274_v30  ;;  %v1862_v46 = vadd.f32 %v1734_v23, %v299_v37 }
  0xbc   :  { %v467_v43 = vsel %vm361_vm1, %v1853_v36, 0.0  ;;  %v437_v44 = vsel %vm361_vm1, %v1850_v35, 0.0 }
  0xbd   :  { %405 = vadd.xlane.f32.xlu2 %v404_v15  ;;  %402 = vadd.xlane.f32.xlu1 %v401_v18  ;;  %v380_v40 = vsel %vm361_vm1, %v1847_v34, 0.0  ;;  %v410_v54 = vsel %vm361_vm1, %v1862_v46, 0.0 }
  0xbe   :  { %435 = vadd.xlane.f32.xlu0 %v434_v16 }
  0xc1   :  { %v324_v41 = vpop.f32.mrf.mxu2  ;;  %v349_v45 = vpop.f32.mrf.mxu3 }
  0xc2   :  { %v1865_v48 = vadd.f32 %v1734_v23, %v324_v41  ;;  %v1868_v50 = vadd.f32 %v1734_v23, %v349_v45  ;;  %v276_v51 = vpop.f32.mrf.mxu0  ;;  %v301_v56 = vpop.f32.mrf.mxu1 }
  0xc3   :  { %v1877_v61 = vadd.f32 %v1734_v23, %v276_v51  ;;  %v1880_v62 = vadd.f32 %v1734_v23, %v301_v56 }
  0xc4   :  { %v440_v53 = vsel %vm361_vm1, %v1865_v48, 0.0  ;;  %v470_v55 = vsel %vm361_vm1, %v1868_v50, 0.0 }
  0xc5   :  { %378 = vadd.xlane.f32.xlu2 %v377_v29  ;;  %465 = vadd.xlane.f32.xlu1 %v464_v25  ;;  %v413_v2 = vsel %vm361_vm1, %v1880_v62, 0.0  ;;  %v383_v6 = vsel %vm361_vm1, %v1877_v61, 0.0  ;;  %v1611_v29 = vmov 16.0  }
  0xc6   :  { %408 = vadd.xlane.f32.xlu0 %v407_v31  ;;  %1527 = vrcp.f32 %v1611_v29 }
  0xc9   :  { %v326_v59 = vpop.f32.mrf.mxu2  ;;  %v351_v0 = vpop.f32.mrf.mxu3 }
  0xca   :  { %v1883_v63 = vadd.f32 %v1734_v23, %v326_v59  ;;  %v279_v1 = vpop.f32.mrf.mxu0  ;;  %v304_v7 = vpop.f32.mrf.mxu1  ;;  %v1898_v14 = vadd.f32 %v1734_v23, %v351_v0 }
  0xcb   :  { %v1892_v9 = vadd.f32 %v1734_v23, %v279_v1  ;;  %v1895_v10 = vadd.f32 %v1734_v23, %v304_v7 }
  0xcc   :  { %v443_v8 = vsel %vm361_vm1, %v1883_v63, 0.0  ;;  %v473_v19 = vsel %vm361_vm1, %v1898_v14, 0.0 }
  0xcd   :  { %468 = vadd.xlane.f32.xlu2 %v467_v43  ;;  %438 = vadd.xlane.f32.xlu1 %v437_v44  ;;  %v386_v15 = vsel %vm361_vm1, %v1892_v9, 0.0  ;;  %v416_v17 = vsel %vm361_vm1, %v1895_v10, 0.0 }
  0xce   :  { %381 = vadd.xlane.f32.xlu0 %v380_v40  ;;  %v1528_v40 = vpop.eup %1527 }
  0xcf   :  { %v483_v51 = vmul.f32 16.0, %v1528_v40  ;;  %vm487_vm2 = vweird.f32 %v1528_v40 }
  0xd1   :  { %v329_v16 = vpop.f32.mrf.mxu2  ;;  %v354_v18 = vpop.f32.mrf.mxu3  ;;  %v484_v56 = vsub.f32 1.0, %v483_v51 }
  0xd2   :  { %v281_v24 = vpop.f32.mrf.mxu0  ;;  %v1907_v25 = vadd.f32 %v1734_v23, %v329_v16  ;;  %v1910_v28 = vadd.f32 %v1734_v23, %v354_v18  ;;  %v306_v41 = vpop.f32.mrf.mxu1 }
  0xd3   :  { %v1913_v30 = vadd.f32 %v1734_v23, %v281_v24 }
  0xd4   :  { %v476_v31 = vsel %vm361_vm1, %v1910_v28, 0.0  ;;  %v446_v37 = vsel %vm361_vm1, %v1907_v25, 0.0 }
  0xd5   :  { %441 = vadd.xlane.f32.xlu2 %v440_v53  ;;  %411 = vadd.xlane.f32.xlu1 %v410_v54  ;;  %v389_v44 = vsel %vm361_vm1, %v1913_v30, 0.0  ;;  %v1922_v53 = vadd.f32 %v1734_v23, %v306_v41 }
  0xd6   :  { %471 = vadd.xlane.f32.xlu0 %v470_v55 }
  0xd7   :  { %v419_v0 = vsel %vm361_vm1, %v1922_v53, 0.0 }
  0xd9   :  { %v331_v43 = vpop.f32.mrf.mxu2  ;;  %v356_v45 = vpop.f32.mrf.mxu3 }
  0xda   :  { %v1925_v54 = vadd.f32 %v1734_v23, %v331_v43  ;;  %v1928_v55 = vadd.f32 %v1734_v23, %v356_v45 }
  0xdc   :  { %v449_v59 = vsel %vm361_vm1, %v1925_v54, 0.0  ;;  %v479_v1 = vsel %vm361_vm1, %v1928_v55, 0.0 }
  0xdd   :  { %414 = vadd.xlane.f32.xlu2 %v413_v2  ;;  %384 = vadd.xlane.f32.xlu1 %v383_v6  ;;  %v485_v2 = vmul.f32 %v1528_v40, %v484_v56 }
  0xde   :  { %444 = vadd.xlane.f32.xlu0 %v443_v8 }
  0xdf   :  { %v486_v6 = vadd.f32 %v1528_v40, %v485_v2 }
  0xe1   :  { %v1936_v7 = vsel %vm487_vm2, %v1528_v40, %v486_v6 }
  0xe5   :  { %387 = vadd.xlane.f32.xlu2 %v386_v15  ;;  %474 = vadd.xlane.f32.xlu1 %v473_v19 }
  0xe6   :  { %417 = vadd.xlane.f32.xlu0 %v416_v17 }
  0xed   :  { %477 = vadd.xlane.f32.xlu2 %v476_v31  ;;  %447 = vadd.xlane.f32.xlu1 %v446_v37 }
  0xee   :  { %390 = vadd.xlane.f32.xlu0 %v389_v44 }
  0xf5   :  { %450 = vadd.xlane.f32.xlu2 %v449_v59  ;;  %420 = vadd.xlane.f32.xlu1 %v419_v0 }
  0xf6   :  { %480 = vadd.xlane.f32.xlu0 %v479_v1 }
 0x101   :  { %v394_v23 = vpop.xlane.xlu1 %393  ;;  %v364_v8 = vpop.xlane.xlu0 %363 }
 0x102   :  { %v499_v15 = vmul.f32 %v1936_v7, %v394_v23  ;;  %v489_v16 = vmul.f32 %v1936_v7, %v364_v8 }
 0x104   :  { %v1941_v17 = vsub.f32 %v1740_v27, %v499_v15  ;;  %v1944_v18 = vsub.f32 %v1737_v26, %v489_v16 }
 0x106   :  { %v579_v19 = vmul.f32 %v1941_v17, %v1941_v17  ;;  %v569_v24 = vmul.f32 %v1944_v18, %v1944_v18 }
 0x108   :  { %v424_v29 = vpop.xlane.xlu2 %423  ;;  %v639_v31 = vsel %vm361_vm1, %v579_v19, 0.0  ;;  %v609_v37 = vsel %vm361_vm1, %v569_v24, 0.0 }
 0x109   :  { %v509_v40 = vmul.f32 %v1936_v7, %v424_v29  ;;  %640 = vadd.xlane.f32.xlu2 %v639_v31  ;;  %610 = vadd.xlane.f32.xlu1 %v609_v37  ;;  %v454_v27 = vpop.xlane.xlu0 %453 }
 0x10a   :  { %v519_v41 = vmul.f32 %v1936_v7, %v454_v27 }
 0x10b   :  { %v1955_v26 = vsub.f32 %v1747_v32, %v509_v40 }
 0x10c   :  { %v1958_v43 = vsub.f32 %v1750_v33, %v519_v41 }
 0x10d   :  { %v589_v44 = vmul.f32 %v1955_v26, %v1955_v26 }
 0x10e   :  { %v599_v45 = vmul.f32 %v1958_v43, %v1958_v43 }
 0x10f   :  { %v669_v51 = vsel %vm361_vm1, %v589_v44, 0.0 }
 0x110   :  { %v397_v56 = vpop.xlane.xlu2 %396  ;;  %v457_v59 = vpop.xlane.xlu1 %456  ;;  %670 = vadd.xlane.f32.xlu0 %v669_v51  ;;  %v699_v0 = vsel %vm361_vm1, %v599_v45, 0.0 }
 0x111   :  { %v500_v1 = vmul.f32 %v1936_v7, %v397_v56  ;;  %700 = vadd.xlane.f32.xlu1 %v699_v0  ;;  %v367_v32 = vpop.xlane.xlu0 %366  ;;  %v520_v6 = vmul.f32 %v1936_v7, %v457_v59 }
 0x112   :  { %v490_v33 = vmul.f32 %v1936_v7, %v367_v32 }
 0x113   :  { %v1969_v2 = vsub.f32 %v1757_v38, %v500_v1  ;;  %v1981_v19 = vsub.f32 %v1763_v42, %v520_v6 }
 0x114   :  { %v1973_v23 = vsub.f32 %v1760_v39, %v490_v33 }
 0x115   :  { %v580_v8 = vmul.f32 %v1969_v2, %v1969_v2  ;;  %v600_v42 = vmul.f32 %v1981_v19, %v1981_v19 }
 0x116   :  { %v570_v15 = vmul.f32 %v1973_v23, %v1973_v23 }
 0x117   :  { %v642_v16 = vsel %vm361_vm1, %v580_v8, 0.0 }
 0x118   :  { %v460_v24 = vpop.xlane.xlu2 %459  ;;  %v370_v29 = vpop.xlane.xlu1 %369  ;;  %643 = vadd.xlane.f32.xlu0 %v642_v16  ;;  %v612_v38 = vsel %vm361_vm1, %v570_v15, 0.0 }
 0x119   :  { %v491_v31 = vmul.f32 %v1936_v7, %v370_v29  ;;  %613 = vadd.xlane.f32.xlu2 %v612_v38  ;;  %v427_v39 = vpop.xlane.xlu0 %426  ;;  %v521_v40 = vmul.f32 %v1936_v7, %v460_v24 }
 0x11a   :  { %v510_v37 = vmul.f32 %v1936_v7, %v427_v39 }
 0x11b   :  { %v1988_v27 = vsub.f32 %v1772_v47, %v491_v31  ;;  %v2000_v51 = vsub.f32 %v1778_v52, %v521_v40 }
 0x11c   :  { %v1991_v41 = vsub.f32 %v1775_v49, %v510_v37  ;;  %v702_v49 = vsel %vm361_vm1, %v600_v42, 0.0 }
 0x11d   :  { %v571_v44 = vmul.f32 %v1988_v27, %v1988_v27  ;;  %v601_v8 = vmul.f32 %v2000_v51, %v2000_v51 }
 0x11e   :  { %v590_v45 = vmul.f32 %v1991_v41, %v1991_v41 }
 0x11f   :  { %v615_v56 = vsel %vm361_vm1, %v571_v44, 0.0  ;;  %v705_v38 = vsel %vm361_vm1, %v601_v8, 0.0 }
 0x120   :  { %v433_v59 = vpop.xlane.xlu2 %432  ;;  %v430_v47 = vpop.xlane.xlu1 %429  ;;  %616 = vadd.xlane.f32.xlu0 %v615_v56  ;;  %v672_v0 = vsel %vm361_vm1, %v590_v45, 0.0 }
 0x121   :  { %v511_v1 = vmul.f32 %v1936_v7, %v430_v47  ;;  %703 = vadd.xlane.f32.xlu2 %v702_v49  ;;  %673 = vadd.xlane.f32.xlu1 %v672_v0  ;;  %v400_v32 = vpop.xlane.xlu0 %399  ;;  %v512_v6 = vmul.f32 %v1936_v7, %v433_v59 }
 0x122   :  { %v501_v33 = vmul.f32 %v1936_v7, %v400_v32 }
 0x123   :  { %v2009_v52 = vsub.f32 %v1790_v58, %v511_v1  ;;  %v2021_v29 = vsub.f32 %v1793_v60, %v512_v6 }
 0x124   :  { %v2014_v15 = vsub.f32 %v1787_v57, %v501_v33 }
 0x125   :  { %v591_v16 = vmul.f32 %v2009_v52, %v2009_v52  ;;  %v592_v60 = vmul.f32 %v2021_v29, %v2021_v29 }
 0x126   :  { %v581_v24 = vmul.f32 %v2014_v15, %v2014_v15 }
 0x127   :  { %v675_v39 = vsel %vm361_vm1, %v591_v16, 0.0  ;;  %v678_v56 = vsel %vm361_vm1, %v592_v60, 0.0 }
 0x128   :  { %v376_v31 = vpop.xlane.xlu2 %375  ;;  %v373_v58 = vpop.xlane.xlu1 %372  ;;  %706 = vadd.xlane.f32.xlu0 %v705_v38  ;;  %v645_v37 = vsel %vm361_vm1, %v581_v24, 0.0 }
 0x129   :  { %v492_v57 = vmul.f32 %v1936_v7, %v373_v58  ;;  %676 = vadd.xlane.f32.xlu2 %v675_v39  ;;  %646 = vadd.xlane.f32.xlu1 %v645_v37  ;;  %v463_v40 = vpop.xlane.xlu0 %462  ;;  %v493_v33 = vmul.f32 %v1936_v7, %v376_v31 }
 0x12a   :  { %v522_v44 = vmul.f32 %v1936_v7, %v463_v40 }
 0x12b   :  { %v2028_v42 = vsub.f32 %v1805_v4, %v492_v57  ;;  %v2057_v58 = vsub.f32 %v1802_v3, %v493_v33 }
 0x12c   :  { %v2037_v59 = vsub.f32 %v1808_v5, %v522_v44 }
 0x12d   :  { %v572_v45 = vmul.f32 %v2028_v42, %v2028_v42 }
 0x12e   :  { %v602_v16 = vmul.f32 %v2037_v59, %v2037_v59 }
 0x12f   :  { %v618_v0 = vsel %vm361_vm1, %v572_v45, 0.0  ;;  %v573_v45 = vmul.f32 %v2057_v58, %v2057_v58 }
 0x130   :  { %v406_v47 = vpop.xlane.xlu2 %405  ;;  %v403_v49 = vpop.xlane.xlu1 %402  ;;  %679 = vadd.xlane.f32.xlu0 %v678_v56  ;;  %v708_v57 = vsel %vm361_vm1, %v602_v16, 0.0 }
 0x131   :  { %v503_v4 = vmul.f32 %v1936_v7, %v406_v47  ;;  %v502_v1 = vmul.f32 %v1936_v7, %v403_v49  ;;  %619 = vadd.xlane.f32.xlu1 %v618_v0  ;;  %v436_v32 = vpop.xlane.xlu0 %435 }
 0x132   :  { %v513_v5 = vmul.f32 %v1936_v7, %v436_v32 }
 0x133   :  { %v2044_v6 = vsub.f32 %v1817_v11, %v503_v4  ;;  %v2047_v8 = vsub.f32 %v1823_v13, %v502_v1 }
 0x134   :  { %v2062_v13 = vsub.f32 %v1820_v12, %v513_v5 }
 0x135   :  { %v583_v24 = vmul.f32 %v2044_v6, %v2044_v6  ;;  %v582_v38 = vmul.f32 %v2047_v8, %v2047_v8 }
 0x136   :  { %v593_v56 = vmul.f32 %v2062_v13, %v2062_v13 }
 0x137   :  { %v651_v11 = vsel %vm361_vm1, %v583_v24, 0.0  ;;  %v648_v31 = vsel %vm361_vm1, %v582_v38, 0.0 }
 0x138   :  { %v379_v39 = vpop.xlane.xlu2 %378  ;;  %v466_v37 = vpop.xlane.xlu1 %465  ;;  %652 = vadd.xlane.f32.xlu0 %v651_v11  ;;  %649 = vadd.xlane.f32.xlu2 %v648_v31  ;;  %v681_v33 = vsel %vm361_vm1, %v593_v56, 0.0 }
 0x139   :  { %v494_v40 = vmul.f32 %v1936_v7, %v379_v39  ;;  %709 = vadd.xlane.f32.xlu1 %v708_v57  ;;  %v409_v60 = vpop.xlane.xlu0 %408  ;;  %v523_v44 = vmul.f32 %v1936_v7, %v466_v37 }
 0x13a   :  { %v504_v12 = vmul.f32 %v1936_v7, %v409_v60 }
 0x13b   :  { %v2067_v3 = vsub.f32 %v1835_v21, %v494_v40  ;;  %v2078_v49 = vsub.f32 %v1832_v20, %v523_v44  ;;  %v621_v21 = vsel %vm361_vm1, %v573_v45, 0.0 }
 0x13c   :  { %v2083_v4 = vsub.f32 %v1838_v22, %v504_v12 }
 0x13d   :  { %v574_v47 = vmul.f32 %v2067_v3, %v2067_v3  ;;  %v603_v38 = vmul.f32 %v2078_v49, %v2078_v49 }
 0x13e   :  { %v584_v11 = vmul.f32 %v2083_v4, %v2083_v4 }
 0x13f   :  { %v624_v0 = vsel %vm361_vm1, %v574_v47, 0.0 }
 0x140   :  { %v469_v1 = vpop.xlane.xlu2 %468  ;;  %v439_v32 = vpop.xlane.xlu1 %438  ;;  %625 = vadd.xlane.f32.xlu0 %v624_v0  ;;  %622 = vadd.xlane.f32.xlu2 %v621_v21  ;;  %v654_v44 = vsel %vm361_vm1, %v584_v11, 0.0 }
 0x141   :  { %v524_v5 = vmul.f32 %v1936_v7, %v469_v1  ;;  %682 = vadd.xlane.f32.xlu1 %v681_v33  ;;  %v382_v16 = vpop.xlane.xlu0 %381  ;;  %v514_v24 = vmul.f32 %v1936_v7, %v439_v32 }
 0x142   :  { %v495_v22 = vmul.f32 %v1936_v7, %v382_v16 }
 0x143   :  { %v2088_v20 = vsub.f32 %v1853_v36, %v524_v5  ;;  %v2099_v39 = vsub.f32 %v1850_v35, %v514_v24  ;;  %v711_v36 = vsel %vm361_vm1, %v603_v38, 0.0 }
 0x144   :  { %v2104_v57 = vsub.f32 %v1847_v34, %v495_v22 }
 0x145   :  { %v604_v31 = vmul.f32 %v2088_v20, %v2088_v20  ;;  %v594_v47 = vmul.f32 %v2099_v39, %v2099_v39 }
 0x146   :  { %v575_v0 = vmul.f32 %v2104_v57, %v2104_v57 }
 0x147   :  { %v714_v37 = vsel %vm361_vm1, %v604_v31, 0.0 }
 0x148   :  { %v442_v40 = vpop.xlane.xlu2 %441  ;;  %v412_v60 = vpop.xlane.xlu1 %411  ;;  %715 = vadd.xlane.f32.xlu0 %v714_v37  ;;  %712 = vadd.xlane.f32.xlu2 %v711_v36  ;;  %v627_v24 = vsel %vm361_vm1, %v575_v0, 0.0 }
 0x149   :  { %v515_v45 = vmul.f32 %v1936_v7, %v442_v40  ;;  %655 = vadd.xlane.f32.xlu1 %v654_v44  ;;  %v472_v12 = vpop.xlane.xlu0 %471  ;;  %v505_v56 = vmul.f32 %v1936_v7, %v412_v60 }
 0x14a   :  { %v525_v34 = vmul.f32 %v1936_v7, %v472_v12 }
 0x14b   :  { %v2109_v35 = vsub.f32 %v1865_v48, %v515_v45  ;;  %v2120_v1 = vsub.f32 %v1862_v46, %v505_v56  ;;  %v684_v48 = vsel %vm361_vm1, %v594_v47, 0.0 }
 0x14c   :  { %v2125_v33 = vsub.f32 %v1868_v50, %v525_v34 }
 0x14d   :  { %v595_v21 = vmul.f32 %v2109_v35, %v2109_v35  ;;  %v585_v31 = vmul.f32 %v2120_v1, %v2120_v1 }
 0x14e   :  { %v605_v37 = vmul.f32 %v2125_v33, %v2125_v33 }
 0x14f   :  { %v687_v32 = vsel %vm361_vm1, %v595_v21, 0.0 }
 0x150   :  { %v415_v5 = vpop.xlane.xlu2 %414  ;;  %v385_v16 = vpop.xlane.xlu1 %384  ;;  %688 = vadd.xlane.f32.xlu0 %v687_v32  ;;  %685 = vadd.xlane.f32.xlu2 %v684_v48  ;;  %v717_v56 = vsel %vm361_vm1, %v605_v37, 0.0 }
 0x151   :  { %v506_v38 = vmul.f32 %v1936_v7, %v415_v5  ;;  %628 = vadd.xlane.f32.xlu1 %v627_v24  ;;  %v445_v22 = vpop.xlane.xlu0 %444  ;;  %v496_v11 = vmul.f32 %v1936_v7, %v385_v16 }
 0x152   :  { %v516_v50 = vmul.f32 %v1936_v7, %v445_v22 }
 0x153   :  { %v2130_v46 = vsub.f32 %v1880_v62, %v506_v38  ;;  %v2141_v40 = vsub.f32 %v1877_v61, %v496_v11  ;;  %v657_v62 = vsel %vm361_vm1, %v585_v31, 0.0 }
 0x154   :  { %v2146_v44 = vsub.f32 %v1883_v63, %v516_v50 }
 0x155   :  { %v586_v36 = vmul.f32 %v2130_v46, %v2130_v46  ;;  %v576_v0 = vmul.f32 %v2141_v40, %v2141_v40 }
 0x156   :  { %v596_v63 = vmul.f32 %v2146_v44, %v2146_v44 }
 0x157   :  { %v660_v60 = vsel %vm361_vm1, %v586_v36, 0.0  ;;  %v630_v5 = vsel %vm361_vm1, %v576_v0, 0.0 }
 0x158   :  { %v388_v45 = vpop.xlane.xlu2 %387  ;;  %v475_v12 = vpop.xlane.xlu1 %474  ;;  %661 = vadd.xlane.f32.xlu0 %v660_v60  ;;  %658 = vadd.xlane.f32.xlu2 %v657_v62  ;;  %v690_v38 = vsel %vm361_vm1, %v596_v63, 0.0 }
 0x159   :  { %v497_v47 = vmul.f32 %v1936_v7, %v388_v45  ;;  %718 = vadd.xlane.f32.xlu1 %v717_v56  ;;  %v418_v34 = vpop.xlane.xlu0 %417  ;;  %v526_v0 = vmul.f32 %v1936_v7, %v475_v12 }
 0x15a   :  { %v507_v21 = vmul.f32 %v1936_v7, %v418_v34 }
 0x15b   :  { %v2151_v61 = vsub.f32 %v1892_v9, %v497_v47  ;;  %v2198_v12 = vsub.f32 %v1898_v14, %v526_v0 }
 0x15c   :  { %v2163_v16 = vsub.f32 %v1895_v10, %v507_v21 }
 0x15d   :  { %v577_v32 = vmul.f32 %v2151_v61, %v2151_v61  ;;  %v606_v14 = vmul.f32 %v2198_v12, %v2198_v12 }
 0x15e   :  { %v587_v37 = vmul.f32 %v2163_v16, %v2163_v16 }
 0x15f   :  { %v633_v48 = vsel %vm361_vm1, %v577_v32, 0.0 }
 0x160   :  { %v478_v9 = vpop.xlane.xlu2 %477  ;;  %v448_v24 = vpop.xlane.xlu1 %447  ;;  %634 = vadd.xlane.f32.xlu0 %v633_v48  ;;  %631 = vadd.xlane.f32.xlu2 %v630_v5  ;;  %v663_v56 = vsel %vm361_vm1, %v587_v37, 0.0  ;;  %v720_v37 = vsel %vm361_vm1, %v606_v14, 0.0 }
 0x161   :  { %v517_v22 = vmul.f32 %v1936_v7, %v448_v24  ;;  %691 = vadd.xlane.f32.xlu1 %v690_v38  ;;  %v391_v11 = vpop.xlane.xlu0 %390  ;;  %v527_v21 = vmul.f32 %v1936_v7, %v478_v9 }
 0x162   :  { %v498_v50 = vmul.f32 %v1936_v7, %v391_v11 }
 0x163   :  { %v2168_v31 = vsub.f32 %v1907_v25, %v517_v22 }
 0x164   :  { %v2177_v60 = vsub.f32 %v1913_v30, %v498_v50 }
 0x165   :  { %v597_v10 = vmul.f32 %v2168_v31, %v2168_v31 }
 0x166   :  { %v578_v48 = vmul.f32 %v2177_v60, %v2177_v60 }
 0x167   :  { %v693_v36 = vsel %vm361_vm1, %v597_v10, 0.0 }
 0x168   :  { %v451_v62 = vpop.xlane.xlu2 %450  ;;  %v421_v45 = vpop.xlane.xlu1 %420  ;;  %694 = vadd.xlane.f32.xlu2 %v693_v36  ;;  %v636_v22 = vsel %vm361_vm1, %v578_v48, 0.0 }
 0x169   :  { %v518_v25 = vmul.f32 %v1936_v7, %v451_v62  ;;  %v508_v47 = vmul.f32 %v1936_v7, %v421_v45  ;;  %664 = vadd.xlane.f32.xlu1 %v663_v56  ;;  %v481_v34 = vpop.xlane.xlu0 %480 }
 0x16a   :  { %v528_v32 = vmul.f32 %v1936_v7, %v481_v34 }
 0x16b   :  { %v2185_v63 = vsub.f32 %v1925_v54, %v518_v25  ;;  %v2188_v30 = vsub.f32 %v1922_v53, %v508_v47  ;;  %v2201_v54 = vsub.f32 %v1910_v28, %v527_v21 }
 0x16c   :  { %v2206_v38 = vsub.f32 %v1928_v55, %v528_v32 }
 0x16d   :  { %v598_v5 = vmul.f32 %v2185_v63, %v2185_v63  ;;  %v588_v24 = vmul.f32 %v2188_v30, %v2188_v30  ;;  %2985 = vst [vmem:[#allocation2_spill] sm:$0xff] %v2201_v54  ;;  %v607_v11 = vmul.f32 %v2201_v54, %v2201_v54 }
 0x16e   :  { %2986 = vst [vmem:[#allocation3_spill] sm:$0xff] %v2206_v38  ;;  %v608_v28 = vmul.f32 %v2206_v38, %v2206_v38 }
 0x16f   :  { %v696_v53 = vsel %vm361_vm1, %v598_v5, 0.0  ;;  %v666_v9 = vsel %vm361_vm1, %v588_v24, 0.0  ;;  %v723_v50 = vsel %vm361_vm1, %v607_v11, 0.0 }
 0x170   :  { %697 = vadd.xlane.f32.xlu0 %v696_v53  ;;  %667 = vadd.xlane.f32.xlu2 %v666_v9  ;;  %v726_v55 = vsel %vm361_vm1, %v608_v28, 0.0 }
 0x171   :  { %637 = vadd.xlane.f32.xlu1 %v636_v22 }
 0x178   :  { %724 = vadd.xlane.f32.xlu0 %v723_v50  ;;  %721 = vadd.xlane.f32.xlu2 %v720_v37 }
 0x179   :  { %727 = vadd.xlane.f32.xlu1 %v726_v55 }
 0x17c   :  { %v641_v10 = vpop.xlane.xlu2 %640  ;;  %v611_v36 = vpop.xlane.xlu1 %610 }
 0x17d   :  { %v739_v62 = vmul.f32 %v641_v10, %v1936_v7  ;;  %v729_v45 = vmul.f32 %v611_v36, %v1936_v7 }
 0x17f   :  { %v779_v56 = vadd.f32 1e-06, %v739_v62  ;;  %v769_v25 = vadd.f32 1e-06, %v729_v45 }
 0x181   :  { %1529 = vrsqrt.f32 %v779_v56  ;;  %vm915_vm5 = vweird.f32 %v779_v56  ;;  %vm815_vm7 = vweird.f32 %v769_v25 }
 0x182   :  { %1531 = vrsqrt.f32 %v769_v25 }
 0x183   :  { %v671_v47 = vpop.xlane.xlu0 %670 }
 0x184   :  { %v749_v34 = vmul.f32 %v671_v47, %v1936_v7  ;;  %v701_v0 = vpop.xlane.xlu1 %700 }
 0x185   :  { %v759_v21 = vmul.f32 %v701_v0, %v1936_v7 }
 0x186   :  { %v2222_v32 = vadd.f32 1e-06, %v749_v34 }
 0x187   :  { %v1530_v48 = vpop.eup %1529  ;;  %v2224_v5 = vadd.f32 1e-06, %v759_v21 }
 0x188   :  { %v1532_v24 = vpop.eup %1531  ;;  %v910_v53 = vmul.f32 %v1530_v48, %v779_v56  ;;  %1533 = vrsqrt.f32 %v2222_v32  ;;  %vm916_vm3 = vweird.f32 %v1530_v48  ;;  %v2246_v56 = vld [vmem:[%s2981_s4] ss:$0 sm:$0xff]  ;;  %vm1015_vm9 = vweird.f32 %v2222_v32 }
 0x189   :  { %v810_v9 = vmul.f32 %v1532_v24, %v769_v25  ;;  %1535 = vrsqrt.f32 %v2224_v5  ;;  %vm816_vm4 = vweird.f32 %v1532_v24  ;;  %vm917_vm6 = vmor %vm915_vm5, %vm916_vm3  ;;  %vm1115_vm13 = vweird.f32 %v2224_v5 }
 0x18a   :  { %v911_v22 = vmul.f32 %v1530_v48, %v910_v53  ;;  %vm817_vm8 = vmor %vm815_vm7, %vm816_vm4 }
 0x18b   :  { %v811_v11 = vmul.f32 %v1532_v24, %v810_v9  ;;  %v644_v14 = vpop.xlane.xlu0 %643 }
 0x18c   :  { %v912_v28 = vmul.f32 0.5, %v911_v22  ;;  %v740_v50 = vmul.f32 %v644_v14, %v1936_v7  ;;  %v614_v37 = vpop.xlane.xlu2 %613  ;;  %v2240_v22 = vld [vmem:[%s2980_s3] ss:$0 sm:$0xff] }
 0x18d   :  { %v812_v55 = vmul.f32 0.5, %v811_v11  ;;  %v730_v10 = vmul.f32 %v614_v37, %v1936_v7 }
 0x18e   :  { %v1534_v36 = vpop.eup %1533  ;;  %v913_v62 = vsub.f32 1.5, %v912_v28  ;;  %v2230_v45 = vadd.f32 1e-06, %v740_v50 }
 0x18f   :  { %v1536_v47 = vpop.eup %1535  ;;  %v813_v34 = vsub.f32 1.5, %v812_v55  ;;  %v1010_v0 = vmul.f32 %v1534_v36, %v2222_v32  ;;  %v2233_v21 = vadd.f32 1e-06, %v730_v10  ;;  %vm1016_vm10 = vweird.f32 %v1534_v36 }
 0x190   :  { %v914_v53 = vmul.f32 %v1530_v48, %v913_v62  ;;  %v1110_v9 = vmul.f32 %v1536_v47, %v2224_v5  ;;  %1537 = vrsqrt.f32 %v2230_v45  ;;  %vm1116_vm11 = vweird.f32 %v1536_v47  ;;  %vm1017_vm12 = vmor %vm1015_vm9, %vm1016_vm10 }
 0x191   :  { %v814_v11 = vmul.f32 %v1532_v24, %v813_v34  ;;  %v1011_v14 = vmul.f32 %v1534_v36, %v1010_v0  ;;  %1539 = vrsqrt.f32 %v2233_v21  ;;  %vm1117_vm14 = vmor %vm1115_vm13, %vm1116_vm11  ;;  %vm925_vm2 = vweird.f32 %v2230_v45 }
 0x192   :  { %v918_v28 = vsel %vm917_vm6, %v1530_v48, %v914_v53  ;;  %v1111_v50 = vmul.f32 %v1536_v47, %v1110_v9  ;;  %vm825_vm4 = vweird.f32 %v2233_v21 }
 0x193   :  { %v1219_v37 = vmul.f32 %v918_v28, %v1941_v17  ;;  %v818_v55 = vsel %vm817_vm8, %v1532_v24, %v814_v11  ;;  %v1012_v10 = vmul.f32 0.5, %v1011_v14  ;;  %v617_v62 = vpop.xlane.xlu0 %616 }
 0x194   :  { %v1209_v38 = vmul.f32 %v818_v55, %v1944_v18  ;;  %v1112_v25 = vmul.f32 0.5, %v1111_v50  ;;  %v731_v34 = vmul.f32 %v617_v62, %v1936_v7  ;;  %v704_v48 = vpop.xlane.xlu2 %703  ;;  %v674_v0 = vpop.xlane.xlu1 %673 }
 0x195   :  { %v1262_v53 = vmul.f32 %v2240_v22, %v1219_v37  ;;  %v1013_v9 = vsub.f32 1.5, %v1012_v10  ;;  %v760_v18 = vmul.f32 %v704_v48, %v1936_v7  ;;  %v750_v62 = vmul.f32 %v674_v0, %v1936_v7 }
 0x196   :  { %v1538_v54 = vpop.eup %1537  ;;  %v1252_v17 = vmul.f32 %v2240_v22, %v1209_v38  ;;  %v1113_v24 = vsub.f32 1.5, %v1112_v25  ;;  %v2254_v11 = vadd.f32 1e-06, %v731_v34 }
 0x197   :  { %v1540_v14 = vpop.eup %1539  ;;  %v1305_v28 = vadd.f32 %v2246_v56, %v1262_v53  ;;  %v1014_v50 = vmul.f32 %v1534_v36, %v1013_v9  ;;  %v920_v55 = vmul.f32 %v1538_v54, %v2230_v45  ;;  %v2276_v0 = vadd.f32 1e-06, %v760_v18 }
 0x198   :  { %v1295_v37 = vadd.f32 %v2246_v56, %v1252_v17  ;;  %v1114_v10 = vmul.f32 %v1536_v47, %v1113_v24  ;;  %v820_v38 = vmul.f32 %v1540_v14, %v2233_v21  ;;  %1541 = vrsqrt.f32 %v2254_v11 }
 0x199   :  { %1345 = vst.msk [vmem:[%s2982_s5 + $0x50] sm:$0xff] %vm361_vm1, %v1305_v28  ;;  %v1018_v25 = vsel %vm1017_vm12, %v1534_v36, %v1014_v50  ;;  %v921_v34 = vmul.f32 %v1538_v54, %v920_v55  ;;  %v2279_v36 = vadd.f32 1e-06, %v750_v62  ;;  %vm926_vm15 = vweird.f32 %v1538_v54 }
 0x19a   :  { %1335 = vst.msk [vmem:[%s2982_s5] sm:$0xff] %vm361_vm1, %v1295_v37  ;;  %v1229_v32 = vmul.f32 %v1018_v25, %v1955_v26  ;;  %v1118_v5 = vsel %vm1117_vm14, %v1536_v47, %v1114_v10  ;;  %v821_v48 = vmul.f32 %v1540_v14, %v820_v38  ;;  %1543 = vrsqrt.f32 %v2276_v0  ;;  %vm927_vm3 = vmor %vm925_vm2, %vm926_vm15 }
 0x19b   :  { %v1239_v53 = vmul.f32 %v1118_v5, %v1958_v43  ;;  %v922_v9 = vmul.f32 0.5, %v921_v34  ;;  %v707_v17 = vpop.xlane.xlu0 %706  ;;  %vm826_vm0 = vweird.f32 %v1540_v14  ;;  %1545 = vrsqrt.f32 %v2279_v36 }
 0x19c   :  { %v1272_v24 = vmul.f32 %v2240_v22, %v1229_v32  ;;  %v822_v28 = vmul.f32 0.5, %v821_v48  ;;  %v677_v50 = vpop.xlane.xlu2 %676  ;;  %v647_v55 = vpop.xlane.xlu1 %646  ;;  %v761_v62 = vmul.f32 %v707_v17, %v1936_v7  ;;  %vm827_vm5 = vmor %vm825_vm4, %vm826_vm0  ;;  %vm835_vm6 = vweird.f32 %v2254_v11 }
 0x19d   :  { %v1282_v26 = vmul.f32 %v2240_v22, %v1239_v53  ;;  %v923_v47 = vsub.f32 1.5, %v922_v9  ;;  %v751_v37 = vmul.f32 %v677_v50, %v1936_v7  ;;  %v741_v34 = vmul.f32 %v647_v55, %v1936_v7 }
 0x19e   :  { %v1315_v43 = vadd.f32 %v2246_v56, %v1272_v24  ;;  %v823_v18 = vsub.f32 1.5, %v822_v28  ;;  %v1542_v10 = vpop.eup %1541  ;;  %v2298_v48 = vadd.f32 1e-06, %v761_v62  ;;  %vm1125_vm8 = vweird.f32 %v2276_v0 }
 0x19f   :  { %v1325_v38 = vadd.f32 %v2246_v56, %v1282_v26  ;;  %v924_v25 = vmul.f32 %v1538_v54, %v923_v47  ;;  %v830_v5 = vmul.f32 %v1542_v10, %v2254_v11  ;;  %v2305_v53 = vadd.f32 1e-06, %v751_v37 }
 0x1a0   :  { %1355 = vst.msk [vmem:[%s2982_s5 + $0xa0] sm:$0xff] %vm361_vm1, %v1315_v43  ;;  %v824_v32 = vmul.f32 %v1540_v14, %v823_v18  ;;  %v2307_v9 = vadd.f32 1e-06, %v741_v34  ;;  %v1544_v17 = vpop.eup %1543  ;;  %1547 = vrsqrt.f32 %v2298_v48  ;;  %vm836_vm7 = vweird.f32 %v1542_v10 }
 0x1a1   :  { %1365 = vst.msk [vmem:[%s2982_s5 + $0xf0] sm:$0xff] %vm361_vm1, %v1325_v38  ;;  %v928_v45 = vsel %vm927_vm3, %v1538_v54, %v924_v25  ;;  %v831_v28 = vmul.f32 %v1542_v10, %v830_v5  ;;  %v1546_v50 = vpop.eup %1545  ;;  %v1120_v26 = vmul.f32 %v1544_v17, %v2276_v0  ;;  %1549 = vrsqrt.f32 %v2305_v53  ;;  %vm837_vm10 = vmor %vm835_vm6, %vm836_vm7 }
 0x1a2   :  { %v1220_v24 = vmul.f32 %v928_v45, %v1969_v2  ;;  %v828_v21 = vsel %vm827_vm5, %v1540_v14, %v824_v32  ;;  %v1020_v18 = vmul.f32 %v1546_v50, %v2279_v36  ;;  %1551 = vrsqrt.f32 %v2307_v9 }
 0x1a3   :  { %v1210_v55 = vmul.f32 %v828_v21, %v1973_v23  ;;  %v680_v47 = vpop.xlane.xlu0 %679  ;;  %v832_v43 = vmul.f32 0.5, %v831_v28  ;;  %v1121_v14 = vmul.f32 %v1544_v17, %v1120_v26  ;;  %vm1025_vm9 = vweird.f32 %v2279_v36 }
 0x1a4   :  { %v1263_v54 = vmul.f32 %v2240_v22, %v1220_v24  ;;  %v620_v62 = vpop.xlane.xlu1 %619  ;;  %v1021_v38 = vmul.f32 %v1546_v50, %v1020_v18  ;;  %v752_v32 = vmul.f32 %v680_v47, %v1936_v7  ;;  %vm1126_vm11 = vweird.f32 %v1544_v17 }
 0x1a5   :  { %v1253_v2 = vmul.f32 %v2240_v22, %v1210_v55  ;;  %v833_v23 = vsub.f32 1.5, %v832_v43  ;;  %v1122_v34 = vmul.f32 0.5, %v1121_v14  ;;  %v732_v21 = vmul.f32 %v620_v62, %v1936_v7  ;;  %vm1127_vm14 = vmor %vm1125_vm8, %vm1126_vm11 }
 0x1a6   :  { %v1306_v37 = vadd.f32 %v2246_v56, %v1263_v54  ;;  %v2323_v5 = vpop.eup %1547  ;;  %v1022_v24 = vmul.f32 0.5, %v1021_v38  ;;  %v2340_v26 = vadd.f32 1e-06, %v752_v32  ;;  %vm1026_vm12 = vweird.f32 %v1546_v50 }
 0x1a7   :  { %v1296_v25 = vadd.f32 %v2246_v56, %v1253_v2  ;;  %v834_v45 = vmul.f32 %v1542_v10, %v833_v23  ;;  %v1123_v28 = vsub.f32 1.5, %v1122_v34  ;;  %v1130_v55 = vmul.f32 %v2323_v5, %v2298_v48  ;;  %v2343_v43 = vpop.eup %1549  ;;  %vm1027_vm0 = vmor %vm1025_vm9, %vm1026_vm12 }
 0x1a8   :  { %1346 = vst.msk [vmem:[%s2982_s5 + $0x58] sm:$0xff] %vm361_vm1, %v1306_v37  ;;  %v1023_v54 = vsub.f32 1.5, %v1022_v24  ;;  %vm1135_vm13 = vweird.f32 %v2298_v48  ;;  %1553 = vrsqrt.f32 %v2340_v26  ;;  %v2348_v37 = vpop.eup %1551  ;;  %v1030_v23 = vmul.f32 %v2343_v43, %v2305_v53 }
 0x1a9   :  { %1336 = vst.msk [vmem:[%s2982_s5 + $0x8] sm:$0xff] %vm361_vm1, %v1296_v25  ;;  %v838_v47 = vsel %vm837_vm10, %v1542_v10, %v834_v45  ;;  %v1124_v62 = vmul.f32 %v1544_v17, %v1123_v28  ;;  %v1131_v11 = vmul.f32 %v2323_v5, %v1130_v55  ;;  %vm1035_vm15 = vweird.f32 %v2305_v53 }
 0x1aa   :  { %v1211_v18 = vmul.f32 %v838_v47, %v1988_v27  ;;  %v1024_v10 = vmul.f32 %v1546_v50, %v1023_v54  ;;  %v2356_v27 = vadd.f32 1e-06, %v732_v21  ;;  %v930_v0 = vmul.f32 %v2348_v37, %v2307_v9 }
 0x1ab   :  { %v650_v2 = vpop.xlane.xlu2 %649  ;;  %v653_v14 = vpop.xlane.xlu0 %652  ;;  %v1128_v25 = vsel %vm1127_vm14, %v1544_v17, %v1124_v62  ;;  %v1132_v34 = vmul.f32 0.5, %v1131_v11  ;;  %vm1136_vm2 = vweird.f32 %v2323_v5  ;;  %v1031_v24 = vmul.f32 %v2343_v43, %v1030_v23 }
 0x1ac   :  { %v1254_v38 = vmul.f32 %v2240_v22, %v1211_v18  ;;  %v1240_v32 = vmul.f32 %v1128_v25, %v1981_v19  ;;  %v1028_v45 = vsel %vm1027_vm0, %v1546_v50, %v1024_v10  ;;  %v710_v21 = vpop.xlane.xlu1 %709  ;;  %v931_v36 = vmul.f32 %v2348_v37, %v930_v0  ;;  %vm1137_vm4 = vmor %vm1135_vm13, %vm1136_vm2 }
 0x1ad   :  { %v1230_v17 = vmul.f32 %v1028_v45, %v1991_v41  ;;  %v1133_v55 = vsub.f32 1.5, %v1132_v34  ;;  %v1032_v54 = vmul.f32 0.5, %v1031_v24  ;;  %vm1036_vm3 = vweird.f32 %v2343_v43 }
 0x1ae   :  { %v1297_v28 = vadd.f32 %v2246_v56, %v1254_v38  ;;  %v1283_v47 = vmul.f32 %v2240_v22, %v1240_v32  ;;  %1555 = vrsqrt.f32 %v2356_v27  ;;  %v2373_v19 = vpop.eup %1553  ;;  %v932_v18 = vmul.f32 0.5, %v931_v36  ;;  %vm1037_vm6 = vmor %vm1035_vm15, %vm1036_vm3 }
 0x1af   :  { %v1273_v50 = vmul.f32 %v2240_v22, %v1230_v17  ;;  %v1134_v41 = vmul.f32 %v2323_v5, %v1133_v55  ;;  %v742_v62 = vmul.f32 %v650_v2, %v1936_v7  ;;  %v1033_v10 = vsub.f32 1.5, %v1032_v54 }
 0x1b0   :  { %1337 = vst.msk [vmem:[%s2982_s5 + $0x10] sm:$0xff] %vm361_vm1, %v1297_v28  ;;  %v1326_v11 = vadd.f32 %v2246_v56, %v1283_v47  ;;  %vm936_vm5 = vweird.f32 %v2348_v37  ;;  %v1040_v23 = vmul.f32 %v2373_v19, %v2340_v26  ;;  %v933_v34 = vsub.f32 1.5, %v932_v18 }
 0x1b1   :  { %v1316_v38 = vadd.f32 %v2246_v56, %v1273_v50  ;;  %v1138_v25 = vsel %vm1137_vm4, %v2323_v5, %v1134_v41  ;;  %v2392_v0 = vadd.f32 1e-06, %v742_v62  ;;  %v1034_v45 = vmul.f32 %v2343_v43, %v1033_v10 }
 0x1b2   :  { %1366 = vst.msk [vmem:[%s2982_s5 + $0xf8] sm:$0xff] %vm361_vm1, %v1326_v11  ;;  %v1241_v48 = vmul.f32 %v1138_v25, %v2000_v51  ;;  %v1041_v24 = vmul.f32 %v2373_v19, %v1040_v23  ;;  %v743_v28 = vmul.f32 %v653_v14, %v1936_v7  ;;  %v934_v5 = vmul.f32 %v2348_v37, %v933_v34 }
 0x1b3   :  { %v623_v2 = vpop.xlane.xlu2 %622  ;;  %v626_v32 = vpop.xlane.xlu0 %625  ;;  %1356 = vst.msk [vmem:[%s2982_s5 + $0xa8] sm:$0xff] %vm361_vm1, %v1316_v38  ;;  %vm935_vm7 = vweird.f32 %v2307_v9  ;;  %1557 = vrsqrt.f32 %v2392_v0  ;;  %v762_v51 = vmul.f32 %v710_v21, %v1936_v7  ;;  %v1038_v55 = vsel %vm1037_vm6, %v2343_v43, %v1034_v45 }
 0x1b4   :  { %v1556_v17 = vpop.eup %1555  ;;  %v1284_v14 = vmul.f32 %v2240_v22, %v1241_v48  ;;  %vm937_vm8 = vmor %vm935_vm7, %vm936_vm5  ;;  %v1042_v36 = vmul.f32 0.5, %v1041_v24  ;;  %v2418_v47 = vadd.f32 1e-06, %v743_v28  ;;  %v1231_v53 = vmul.f32 %v1038_v55, %v2009_v52  ;;  %v683_v43 = vpop.xlane.xlu1 %682 }
 0x1b5   :  { %v938_v54 = vsel %vm937_vm8, %v2348_v37, %v934_v5  ;;  %vm1046_vm9 = vweird.f32 %v2373_v19  ;;  %v840_v9 = vmul.f32 %v1556_v17, %v2356_v27  ;;  %vm1045_vm10 = vweird.f32 %v2340_v26 }
 0x1b6   :  { %v1327_v21 = vadd.f32 %v2246_v56, %v1284_v14  ;;  %v1221_v50 = vmul.f32 %v938_v54, %v2014_v15  ;;  %v1043_v41 = vsub.f32 1.5, %v1042_v36  ;;  %1559 = vrsqrt.f32 %v2418_v47  ;;  %vm1047_vm11 = vmor %vm1045_vm10, %vm1046_vm9 }
 0x1b7   :  { %v1274_v18 = vmul.f32 %v2240_v22, %v1231_v53  ;;  %v841_v62 = vmul.f32 %v1556_v17, %v840_v9  ;;  %v2429_v52 = vadd.f32 1e-06, %v762_v51  ;;  %v733_v11 = vmul.f32 %v623_v2, %v1936_v7 }
 0x1b8   :  { %1367 = vst.msk [vmem:[%s2982_s5 + $0x100] sm:$0xff] %vm361_vm1, %v1327_v21  ;;  %v1264_v37 = vmul.f32 %v2240_v22, %v1221_v50  ;;  %v1044_v15 = vmul.f32 %v2373_v19, %v1043_v41  ;;  %v734_v10 = vmul.f32 %v626_v32, %v1936_v7  ;;  %vm846_vm12 = vweird.f32 %v1556_v17 }
 0x1b9   :  { %v1558_v23 = vpop.eup %1557  ;;  %v1317_v38 = vadd.f32 %v2246_v56, %v1274_v18  ;;  %v842_v26 = vmul.f32 0.5, %v841_v62  ;;  %1561 = vrsqrt.f32 %v2429_v52  ;;  %v2451_v24 = vadd.f32 1e-06, %v733_v11 }
 0x1ba   :  { %v1307_v25 = vadd.f32 %v2246_v56, %v1264_v37  ;;  %v1048_v34 = vsel %vm1047_vm11, %v2373_v19, %v1044_v15  ;;  %v940_v48 = vmul.f32 %v1558_v23, %v2392_v0  ;;  %v2453_v28 = vadd.f32 1e-06, %v734_v10 }
 0x1bb   :  { %v713_v45 = vpop.xlane.xlu2 %712  ;;  %1357 = vst.msk [vmem:[%s2982_s5 + $0xb0] sm:$0xff] %vm361_vm1, %v1317_v38  ;;  %v1232_v2 = vmul.f32 %v1048_v34, %v2021_v29  ;;  %v843_v32 = vsub.f32 1.5, %v842_v26  ;;  %v716_v5 = vpop.xlane.xlu0 %715  ;;  %vm845_vm13 = vweird.f32 %v2356_v27  ;;  %v753_v14 = vmul.f32 %v683_v43, %v1936_v7 }
 0x1bc   :  { %v1560_v51 = vpop.eup %1559  ;;  %1347 = vst.msk [vmem:[%s2982_s5 + $0x60] sm:$0xff] %vm361_vm1, %v1307_v25  ;;  %v941_v19 = vmul.f32 %v1558_v23, %v940_v48  ;;  %v763_v53 = vmul.f32 %v713_v45, %v1936_v7  ;;  %vm847_vm14 = vmor %vm845_vm13, %vm846_vm12  ;;  %vm945_vm15 = vweird.f32 %v2392_v0  ;;  %1563 = vrsqrt.f32 %v2451_v24  ;;  %v656_v37 = vpop.xlane.xlu1 %655 }
 0x1bd   :  { %v1275_v55 = vmul.f32 %v2240_v22, %v1232_v2  ;;  %v844_v29 = vmul.f32 %v1556_v17, %v843_v32  ;;  %v950_v36 = vmul.f32 %v1560_v51, %v2418_v47  ;;  %v764_v9 = vmul.f32 %v716_v5, %v1936_v7 }
 0x1be   :  { %v942_v54 = vmul.f32 0.5, %v941_v19  ;;  %1565 = vrsqrt.f32 %v2453_v28  ;;  %vm946_vm0 = vweird.f32 %v1558_v23  ;;  %vm955_vm2 = vweird.f32 %v2418_v47 }
 0x1bf   :  { %v2468_v27 = vpop.eup %1561  ;;  %v1318_v21 = vadd.f32 %v2246_v56, %v1275_v55  ;;  %v848_v50 = vsel %vm847_vm14, %v1556_v17, %v844_v29  ;;  %v951_v41 = vmul.f32 %v1560_v51, %v950_v36  ;;  %v2480_v17 = vadd.f32 1e-06, %v753_v14  ;;  %vm947_vm3 = vmor %vm945_vm15, %vm946_vm0 }
 0x1c0   :  { %v1212_v43 = vmul.f32 %v848_v50, %v2028_v42  ;;  %v943_v18 = vsub.f32 1.5, %v942_v54  ;;  %v1140_v62 = vmul.f32 %v2468_v27, %v2429_v52  ;;  %v2482_v11 = vadd.f32 1e-06, %v763_v53 }
 0x1c1   :  { %1358 = vst.msk [vmem:[%s2982_s5 + $0xb8] sm:$0xff] %vm361_vm1, %v1318_v21  ;;  %v952_v15 = vmul.f32 0.5, %v951_v41  ;;  %v2486_v26 = vadd.f32 1e-06, %v764_v9  ;;  %vm956_vm4 = vweird.f32 %v1560_v51  ;;  %vm1145_vm5 = vweird.f32 %v2429_v52 }
 0x1c2   :  { %v1255_v42 = vmul.f32 %v2240_v22, %v1212_v43  ;;  %v944_v10 = vmul.f32 %v1558_v23, %v943_v18  ;;  %v1141_v38 = vmul.f32 %v2468_v27, %v1140_v62  ;;  %1567 = vrsqrt.f32 %v2480_v17  ;;  %v2492_v34 = vpop.eup %1563  ;;  %vm957_vm7 = vmor %vm955_vm2, %vm956_vm4 }
 0x1c3   :  { %v953_v25 = vsub.f32 1.5, %v952_v15  ;;  %1569 = vrsqrt.f32 %v2482_v11  ;;  %v850_v19 = vmul.f32 %v2492_v34, %v2451_v24  ;;  %vm855_vm6 = vweird.f32 %v2451_v24  ;;  %v686_v55 = vpop.xlane.xlu2 %685  ;;  %v689_v21 = vpop.xlane.xlu0 %688 }
 0x1c4   :  { %v1298_v48 = vadd.f32 %v2246_v56, %v1255_v42  ;;  %v948_v45 = vsel %vm947_vm3, %v1558_v23, %v944_v10  ;;  %v1142_v2 = vmul.f32 0.5, %v1141_v38  ;;  %v2496_v32 = vpop.eup %1565  ;;  %v744_v14 = vmul.f32 %v656_v37, %v1936_v7  ;;  %v629_v10 = vpop.xlane.xlu1 %628 }
 0x1c5   :  { %v1222_v5 = vmul.f32 %v948_v45, %v2047_v8  ;;  %v954_v0 = vmul.f32 %v1560_v51, %v953_v25  ;;  %vm1146_vm8 = vweird.f32 %v2468_v27  ;;  %v860_v8 = vmul.f32 %v2496_v32, %v2453_v28 }
 0x1c6   :  { %1338 = vst.msk [vmem:[%s2982_s5 + $0x18] sm:$0xff] %vm361_vm1, %v1298_v48  ;;  %v1143_v23 = vsub.f32 1.5, %v1142_v2  ;;  %vm865_vm9 = vweird.f32 %v2453_v28  ;;  %1571 = vrsqrt.f32 %v2486_v26  ;;  %v851_v53 = vmul.f32 %v2492_v34, %v850_v19  ;;  %vm1147_vm12 = vmor %vm1145_vm5, %vm1146_vm8 }
 0x1c7   :  { %v1265_v29 = vmul.f32 %v2240_v22, %v1222_v5  ;;  %v958_v36 = vsel %vm957_vm7, %v1560_v51, %v954_v0  ;;  %vm856_vm10 = vweird.f32 %v2492_v34  ;;  %v861_v9 = vmul.f32 %v2496_v32, %v860_v8 }
 0x1c8   :  { %v1223_v47 = vmul.f32 %v958_v36, %v2044_v6  ;;  %v1144_v54 = vmul.f32 %v2468_v27, %v1143_v23  ;;  %vm866_vm11 = vweird.f32 %v2496_v32  ;;  %v2522_v50 = vpop.eup %1567  ;;  %v852_v51 = vmul.f32 0.5, %v851_v53  ;;  %vm857_vm0 = vmor %vm855_vm6, %vm856_vm10 }
 0x1c9   :  { %v1308_v41 = vadd.f32 %v2246_v56, %v1265_v29  ;;  %v2529_v43 = vadd.f32 1e-06, %v744_v14  ;;  %v754_v6 = vmul.f32 %v686_v55, %v1936_v7  ;;  %v2532_v18 = vpop.eup %1569  ;;  %v862_v15 = vmul.f32 0.5, %v861_v9  ;;  %vm867_vm3 = vmor %vm865_vm9, %vm866_vm11 }
 0x1ca   :  { %v1266_v62 = vmul.f32 %v2240_v22, %v1223_v47  ;;  %v1148_v37 = vsel %vm1147_vm12, %v2468_v27, %v1144_v54  ;;  %v1050_v42 = vmul.f32 %v2522_v50, %v2480_v17  ;;  %vm1055_vm13 = vweird.f32 %v2480_v17 }
 0x1cb   :  { %1348 = vst.msk [vmem:[%s2982_s5 + $0x68] sm:$0xff] %vm361_vm1, %v1308_v41  ;;  %v1242_v52 = vmul.f32 %v1148_v37, %v2037_v59  ;;  %v853_v38 = vsub.f32 1.5, %v852_v51  ;;  %v1150_v25 = vmul.f32 %v2532_v18, %v2482_v11  ;;  %vm1155_vm14 = vweird.f32 %v2482_v11  ;;  %v659_v9 = vpop.xlane.xlu2 %658  ;;  %v662_v37 = vpop.xlane.xlu0 %661 }
 0x1cc   :  { %v755_v27 = vmul.f32 %v689_v21, %v1936_v7  ;;  %v1572_v48 = vpop.eup %1571  ;;  %v1309_v45 = vadd.f32 %v2246_v56, %v1266_v62  ;;  %v863_v2 = vsub.f32 1.5, %v862_v15  ;;  %v1051_v5 = vmul.f32 %v2522_v50, %v1050_v42  ;;  %v719_v17 = vpop.xlane.xlu1 %718 }
 0x1cd   :  { %vm1056_vm15 = vweird.f32 %v2522_v50  ;;  %v1285_v0 = vmul.f32 %v2240_v22, %v1242_v52  ;;  %v854_v59 = vmul.f32 %v2492_v34, %v853_v38  ;;  %v1151_v19 = vmul.f32 %v2532_v18, %v1150_v25 }
 0x1ce   :  { %v1160_v14 = vmul.f32 %v1572_v48, %v2486_v26  ;;  %1349 = vst.msk [vmem:[%s2982_s5 + $0x70] sm:$0xff] %vm361_vm1, %v1309_v45  ;;  %v864_v23 = vmul.f32 %v2496_v32, %v863_v2  ;;  %v1052_v8 = vmul.f32 0.5, %v1051_v5  ;;  %vm1156_vm2 = vweird.f32 %v2532_v18  ;;  %vm1057_vm5 = vmor %vm1055_vm13, %vm1056_vm15 }
 0x1cf   :  { %1573 = vrsqrt.f32 %v2529_v43  ;;  %v1328_v55 = vadd.f32 %v2246_v56, %v1285_v0  ;;  %v858_v29 = vsel %vm857_vm0, %v2492_v34, %v854_v59  ;;  %v1152_v36 = vmul.f32 0.5, %v1151_v19  ;;  %vm1157_vm6 = vmor %vm1155_vm14, %vm1156_vm2 }
 0x1d0   :  { %v1161_v53 = vmul.f32 %v1572_v48, %v1160_v14  ;;  %v1213_v24 = vmul.f32 %v858_v29, %v2057_v58  ;;  %v868_v47 = vsel %vm867_vm3, %v2496_v32, %v864_v23  ;;  %v1053_v54 = vsub.f32 1.5, %v1052_v8 }
 0x1d1   :  { %vm1166_vm4 = vweird.f32 %v1572_v48  ;;  %1368 = vst.msk [vmem:[%s2982_s5 + $0x108] sm:$0xff] %vm361_vm1, %v1328_v55  ;;  %v1214_v34 = vmul.f32 %v868_v47, %v2067_v3  ;;  %v1153_v21 = vsub.f32 1.5, %v1152_v36  ;;  %v2579_v28 = vadd.f32 1e-06, %v754_v6 }
 0x1d2   :  { %v1162_v41 = vmul.f32 0.5, %v1161_v53  ;;  %v1256_v51 = vmul.f32 %v2240_v22, %v1213_v24  ;;  %v1054_v58 = vmul.f32 %v2522_v50, %v1053_v54  ;;  %v2583_v62 = vadd.f32 1e-06, %v755_v27 }
 0x1d3   :  { %v735_v32 = vmul.f32 %v629_v10, %v1936_v7  ;;  %v1257_v15 = vmul.f32 %v2240_v22, %v1214_v34  ;;  %v1154_v3 = vmul.f32 %v2532_v18, %v1153_v21  ;;  %1575 = vrsqrt.f32 %v2579_v28  ;;  %v632_v36 = vpop.xlane.xlu2 %631 }
 0x1d4   :  { %v1163_v6 = vsub.f32 1.5, %v1162_v41  ;;  %v1299_v52 = vadd.f32 %v2246_v56, %v1256_v51  ;;  %v1058_v38 = vsel %vm1057_vm5, %v2522_v50, %v1054_v58  ;;  %vm1165_vm7 = vweird.f32 %v2486_v26 }
 0x1d5   :  { %v2593_v42 = vpop.eup %1573  ;;  %1577 = vrsqrt.f32 %v2583_v62  ;;  %v1300_v10 = vadd.f32 %v2246_v56, %v1257_v15  ;;  %v1233_v25 = vmul.f32 %v1058_v38, %v2062_v13  ;;  %v1158_v27 = vsel %vm1157_vm6, %v2532_v18, %v1154_v3  ;;  %vm1167_vm8 = vmor %vm1165_vm7, %vm1166_vm4 }
 0x1d6   :  { %v1164_v45 = vmul.f32 %v1572_v48, %v1163_v6  ;;  %1339 = vst.msk [vmem:[%s2982_s5 + $0x20] sm:$0xff] %vm361_vm1, %v1299_v52  ;;  %v1243_v11 = vmul.f32 %v1158_v27, %v2078_v49  ;;  %v960_v26 = vmul.f32 %v2593_v42, %v2529_v43  ;;  %v2619_v18 = vadd.f32 1e-06, %v735_v32 }
 0x1d7   :  { %1340 = vst.msk [vmem:[%s2982_s5 + $0x28] sm:$0xff] %vm361_vm1, %v1300_v10  ;;  %v1276_v13 = vmul.f32 %v2240_v22, %v1233_v25  ;;  %v745_v2 = vmul.f32 %v659_v9, %v1936_v7  ;;  %vm965_vm9 = vweird.f32 %v2529_v43  ;;  %vm966_vm10 = vweird.f32 %v2593_v42  ;;  %v635_v9 = vpop.xlane.xlu0 %634 }
 0x1d8   :  { %v1168_v50 = vsel %vm1167_vm8, %v1572_v48, %v1164_v45  ;;  %v1286_v5 = vmul.f32 %v2240_v22, %v1243_v11  ;;  %v961_v0 = vmul.f32 %v2593_v42, %v960_v26  ;;  %1579 = vrsqrt.f32 %v2619_v18  ;;  %vm967_vm13 = vmor %vm965_vm9, %vm966_vm10 }
 0x1d9   :  { %v1244_v49 = vmul.f32 %v1168_v50, %v2088_v20  ;;  %v2625_v59 = vpop.eup %1575  ;;  %v1319_v19 = vadd.f32 %v2246_v56, %v1276_v13  ;;  %v2629_v14 = vadd.f32 1e-06, %v745_v2  ;;  %v746_v48 = vmul.f32 %v662_v37, %v1936_v7  ;;  %v692_v37 = vpop.xlane.xlu1 %691 }
 0x1da   :  { %v1329_v8 = vadd.f32 %v2246_v56, %v1286_v5  ;;  %v962_v29 = vmul.f32 0.5, %v961_v0  ;;  %v1060_v20 = vmul.f32 %v2625_v59, %v2579_v28  ;;  %vm1065_vm11 = vweird.f32 %v2579_v28 }
 0x1db   :  { %v2632_v23 = vpop.eup %1577  ;;  %v1287_v55 = vmul.f32 %v2240_v22, %v1244_v49  ;;  %1359 = vst.msk [vmem:[%s2982_s5 + $0xc0] sm:$0xff] %vm361_vm1, %v1319_v19  ;;  %1581 = vrsqrt.f32 %v2629_v14  ;;  %v2655_v21 = vadd.f32 1e-06, %v746_v48  ;;  %v765_v41 = vmul.f32 %v719_v17, %v1936_v7  ;;  %v695_v19 = vpop.xlane.xlu2 %694 }
 0x1dc   :  { %v1070_v53 = vmul.f32 %v2632_v23, %v2583_v62  ;;  %1369 = vst.msk [vmem:[%s2982_s5 + $0x110] sm:$0xff] %vm361_vm1, %v1329_v8  ;;  %v963_v47 = vsub.f32 1.5, %v962_v29  ;;  %v1061_v54 = vmul.f32 %v2625_v59, %v1060_v20  ;;  %vm1075_vm12 = vweird.f32 %v2583_v62 }
 0x1dd   :  { %v1330_v24 = vadd.f32 %v2246_v56, %v1287_v55  ;;  %v736_v32 = vmul.f32 %v632_v36, %v1936_v7  ;;  %1583 = vrsqrt.f32 %v2655_v21  ;;  %v2670_v6 = vadd.f32 1e-06, %v765_v41 }
 0x1de   :  { %v1071_v34 = vmul.f32 %v2632_v23, %v1070_v53  ;;  %v964_v51 = vmul.f32 %v2593_v42, %v963_v47  ;;  %v1062_v58 = vmul.f32 0.5, %v1061_v54  ;;  %v2665_v15 = vpop.eup %1579  ;;  %v737_v52 = vmul.f32 %v635_v9, %v1936_v7 }
 0x1df   :  { %1370 = vst.msk [vmem:[%s2982_s5 + $0x118] sm:$0xff] %vm361_vm1, %v1330_v24  ;;  %vm1066_vm14 = vweird.f32 %v2625_v59  ;;  %v870_v10 = vmul.f32 %v2665_v15, %v2619_v18  ;;  %vm875_vm15 = vweird.f32 %v2619_v18  ;;  %vm1076_vm0 = vweird.f32 %v2632_v23 }
 0x1e0   :  { %v1072_v3 = vmul.f32 0.5, %v1071_v34  ;;  %v968_v38 = vsel %vm967_vm13, %v2593_v42, %v964_v51  ;;  %v1063_v17 = vsub.f32 1.5, %v1062_v58  ;;  %1585 = vrsqrt.f32 %v2670_v6  ;;  %vm1067_vm3 = vmor %vm1065_vm11, %vm1066_vm14 }
 0x1e1   :  { %v2678_v25 = vpop.eup %1581  ;;  %v1224_v43 = vmul.f32 %v968_v38, %v2083_v4  ;;  %v871_v42 = vmul.f32 %v2665_v15, %v870_v10  ;;  %vm975_vm2 = vweird.f32 %v2629_v14  ;;  %v756_v26 = vmul.f32 %v692_v37, %v1936_v7  ;;  %vm1077_vm4 = vmor %vm1075_vm12, %vm1076_vm0  ;;  %v665_v54 = vpop.xlane.xlu1 %664 }
 0x1e2   :  { %v1073_v27 = vsub.f32 1.5, %v1072_v3  ;;  %v1064_v45 = vmul.f32 %v2625_v59, %v1063_v17  ;;  %v970_v11 = vmul.f32 %v2678_v25, %v2629_v14  ;;  %v2693_v50 = vadd.f32 1e-06, %v736_v32 }
 0x1e3   :  { %v1267_v13 = vmul.f32 %v2240_v22, %v1224_v43  ;;  %v2695_v2 = vadd.f32 1e-06, %v737_v52  ;;  %v872_v49 = vmul.f32 0.5, %v871_v42  ;;  %vm876_vm5 = vweird.f32 %v2665_v15  ;;  %v2702_v48 = vpop.eup %1583  ;;  %v668_v42 = vpop.xlane.xlu2 %667 }
 0x1e4   :  { %v1074_v4 = vmul.f32 %v2632_v23, %v1073_v27  ;;  %v1068_v5 = vsel %vm1067_vm3, %v2625_v59, %v1064_v45  ;;  %v971_v0 = vmul.f32 %v2678_v25, %v970_v11  ;;  %1587 = vrsqrt.f32 %v2693_v50  ;;  %vm877_vm7 = vmor %vm875_vm15, %vm876_vm5 }
 0x1e5   :  { %v1310_v28 = vadd.f32 %v2246_v56, %v1267_v13  ;;  %v1234_v8 = vmul.f32 %v1068_v5, %v2099_v39  ;;  %v873_v62 = vsub.f32 1.5, %v872_v49  ;;  %v980_v20 = vmul.f32 %v2702_v48, %v2655_v21 }
 0x1e6   :  { %v1078_v55 = vsel %vm1077_vm4, %v2632_v23, %v1074_v4  ;;  %v972_v29 = vmul.f32 0.5, %v971_v0  ;;  %v2711_v36 = vpop.eup %1585  ;;  %vm976_vm6 = vweird.f32 %v2678_v25  ;;  %1589 = vrsqrt.f32 %v2695_v2 }
 0x1e7   :  { %v1235_v59 = vmul.f32 %v1078_v55, %v2109_v35  ;;  %1350 = vst.msk [vmem:[%s2982_s5 + $0x78] sm:$0xff] %vm361_vm1, %v1310_v28  ;;  %v1277_v39 = vmul.f32 %v2240_v22, %v1234_v8  ;;  %v2720_v23 = vadd.f32 1e-06, %v756_v26  ;;  %v874_v53 = vmul.f32 %v2665_v15, %v873_v62  ;;  %vm977_vm10 = vmor %vm975_vm2, %vm976_vm6  ;;  %v698_v62 = vpop.xlane.xlu0 %697 }
 0x1e8   :  { %v973_v24 = vsub.f32 1.5, %v972_v29  ;;  %v981_v47 = vmul.f32 %v2702_v48, %v980_v20  ;;  %vm985_vm8 = vweird.f32 %v2655_v21  ;;  %v1170_v34 = vmul.f32 %v2711_v36, %v2670_v6 }
 0x1e9   :  { %v1278_v35 = vmul.f32 %v2240_v22, %v1235_v59  ;;  %v1320_v9 = vadd.f32 %v2246_v56, %v1277_v39  ;;  %vm1175_vm9 = vweird.f32 %v2670_v6  ;;  %v878_v51 = vsel %vm877_vm7, %v2665_v15, %v874_v53  ;;  %v638_v29 = vpop.xlane.xlu1 %637 }
 0x1ea   :  { %v974_v58 = vmul.f32 %v2678_v25, %v973_v24  ;;  %v982_v32 = vmul.f32 0.5, %v981_v47  ;;  %v2737_v37 = vpop.eup %1587  ;;  %v1215_v18 = vmul.f32 %v878_v51, %v2104_v57  ;;  %vm986_vm11 = vweird.f32 %v2702_v48 }
 0x1eb   :  { %v1321_v41 = vadd.f32 %v2246_v56, %v1278_v35  ;;  %1360 = vst.msk [vmem:[%s2982_s5 + $0xc8] sm:$0xff] %vm361_vm1, %v1320_v9  ;;  %v1171_v15 = vmul.f32 %v2711_v36, %v1170_v34  ;;  %1591 = vrsqrt.f32 %v2720_v23  ;;  %vm1176_vm12 = vweird.f32 %v2711_v36  ;;  %vm987_vm15 = vmor %vm985_vm8, %vm986_vm11 }
 0x1ec   :  { %v978_v3 = vsel %vm977_vm10, %v2678_v25, %v974_v58  ;;  %v983_v52 = vsub.f32 1.5, %v982_v32  ;;  %v880_v57 = vmul.f32 %v2737_v37, %v2693_v50  ;;  %vm885_vm13 = vweird.f32 %v2693_v50  ;;  %v2760_v14 = vpop.eup %1589  ;;  %vm1177_vm0 = vmor %vm1175_vm9, %vm1176_vm12  ;;  %v2842_v32 = vld [vmem:[%s2981_s4] ss:$0 sm:$0xff] }
 0x1ed   :  { %1361 = vst.msk [vmem:[%s2982_s5 + $0xd0] sm:$0xff] %vm361_vm1, %v1321_v41  ;;  %v1258_v38 = vmul.f32 %v2240_v22, %v1215_v18  ;;  %v1225_v17 = vmul.f32 %v978_v3, %v2120_v1  ;;  %v1172_v10 = vmul.f32 0.5, %v1171_v15  ;;  %v757_v43 = vmul.f32 %v695_v19, %v1936_v7 }
 0x1ee   :  { %v984_v27 = vmul.f32 %v2702_v48, %v983_v52  ;;  %v881_v25 = vmul.f32 %v2737_v37, %v880_v57  ;;  %v890_v45 = vmul.f32 %v2760_v14, %v2695_v2  ;;  %vm895_vm14 = vweird.f32 %v2695_v2  ;;  %v722_v2 = vpop.xlane.xlu2 %721 }
 0x1ef   :  { %v1301_v11 = vadd.f32 %v2246_v56, %v1258_v38  ;;  %v1268_v26 = vmul.f32 %v2240_v22, %v1225_v17  ;;  %v1173_v1 = vsub.f32 1.5, %v1172_v10  ;;  %v2776_v13 = vadd.f32 1e-06, %v757_v43 }
 0x1f0   :  { %v988_v4 = vsel %vm987_vm15, %v2702_v48, %v984_v27  ;;  %v882_v5 = vmul.f32 0.5, %v881_v25  ;;  %v891_v49 = vmul.f32 %v2760_v14, %v890_v45  ;;  %v747_v0 = vmul.f32 %v665_v54, %v1936_v7 }
 0x1f1   :  { %v2781_v19 = vpop.eup %1591  ;;  %1341 = vst.msk [vmem:[%s2982_s5 + $0x30] sm:$0xff] %vm361_vm1, %v1301_v11  ;;  %v1311_v21 = vadd.f32 %v2246_v56, %v1268_v26  ;;  %v1226_v28 = vmul.f32 %v988_v4, %v2130_v46  ;;  %v1174_v8 = vmul.f32 %v2711_v36, %v1173_v1  ;;  %1593 = vrsqrt.f32 %v2776_v13  ;;  %v728_v11 = vpop.xlane.xlu1 %727 }
 0x1f2   :  { %v883_v48 = vsub.f32 1.5, %v882_v5  ;;  %vm886_vm2 = vweird.f32 %v2737_v37  ;;  %v892_v55 = vmul.f32 0.5, %v891_v49  ;;  %v1080_v59 = vmul.f32 %v2781_v19, %v2720_v23 }
 0x1f3   :  { %1351 = vst.msk [vmem:[%s2982_s5 + $0x80] sm:$0xff] %vm361_vm1, %v1311_v21  ;;  %v1269_v46 = vmul.f32 %v2240_v22, %v1226_v28  ;;  %v1178_v20 = vsel %vm1177_vm0, %v2711_v36, %v1174_v8  ;;  %vm896_vm3 = vweird.f32 %v2760_v14  ;;  %v2805_v6 = vadd.f32 1e-06, %v747_v0  ;;  %vm887_vm4 = vmor %vm885_vm13, %vm886_vm2 }
 0x1f4   :  { %v1245_v39 = vmul.f32 %v1178_v20, %v2125_v33  ;;  %v884_v35 = vmul.f32 %v2737_v37, %v883_v48  ;;  %v893_v53 = vsub.f32 1.5, %v892_v55  ;;  %v1081_v24 = vmul.f32 %v2781_v19, %v1080_v59  ;;  %v2821_v33 = vld [vmem:[%s2980_s3] ss:$0 sm:$0xff]  ;;  %vm897_vm6 = vmor %vm895_vm14, %vm896_vm3 }
 0x1f5   :  { %v1312_v47 = vadd.f32 %v2246_v56, %v1269_v46  ;;  %vm1086_vm5 = vweird.f32 %v2781_v19  ;;  %1595 = vrsqrt.f32 %v2805_v6  ;;  %v748_v22 = vmul.f32 %v668_v42, %v1936_v7  ;;  %v725_v42 = vpop.xlane.xlu0 %724 }
 0x1f6   :  { %v1288_v36 = vmul.f32 %v2821_v33, %v1245_v39  ;;  %v888_v56 = vsel %vm887_vm4, %v2737_v37, %v884_v35  ;;  %v894_v54 = vmul.f32 %v2760_v14, %v893_v53  ;;  %v1082_v9 = vmul.f32 0.5, %v1081_v24 }
 0x1f7   :  { %v1594_v50 = vpop.eup %1593  ;;  %1352 = vst.msk [vmem:[%s2982_s5 + $0x88] sm:$0xff] %vm361_vm1, %v1312_v47  ;;  %v1216_v34 = vmul.f32 %v888_v56, %v2141_v40  ;;  %v2835_v41 = vadd.f32 1e-06, %v748_v22  ;;  %v758_v51 = vmul.f32 %v698_v62, %v1936_v7  ;;  %v738_v58 = vmul.f32 %v638_v29, %v1936_v7 }
 0x1f8   :  { %v1331_v37 = vadd.f32 %v2842_v32, %v1288_v36  ;;  %v898_v40 = vsel %vm897_vm6, %v2760_v14, %v894_v54  ;;  %v1083_v18 = vsub.f32 1.5, %v1082_v9  ;;  %v1090_v15 = vmul.f32 %v1594_v50, %v2776_v13 }
 0x1f9   :  { %v1259_v3 = vmul.f32 %v2821_v33, %v1216_v34  ;;  %v1217_v52 = vmul.f32 %v898_v40, %v2151_v61  ;;  %1597 = vrsqrt.f32 %v2835_v41  ;;  %vm1085_vm7 = vweird.f32 %v2720_v23 }
 0x1fa   :  { %1371 = vst.msk [vmem:[%s2982_s5 + $0x120] sm:$0xff] %vm361_vm1, %v1331_v37  ;;  %v1084_v57 = vmul.f32 %v2781_v19, %v1083_v18  ;;  %v1091_v14 = vmul.f32 %v1594_v50, %v1090_v15  ;;  %v2856_v38 = vadd.f32 1e-06, %v758_v51  ;;  %vm1087_vm8 = vmor %vm1085_vm7, %vm1086_vm5  ;;  %v2862_v61 = vadd.f32 1e-06, %v738_v58 }
 0x1fb   :  { %v1596_v17 = vpop.eup %1595  ;;  %v1302_v10 = vadd.f32 %v2842_v32, %v1259_v3  ;;  %v1260_v43 = vmul.f32 %v2821_v33, %v1217_v52  ;;  %v766_v27 = vmul.f32 %v722_v2, %v1936_v7  ;;  %vm1096_vm9 = vweird.f32 %v1594_v50 }
 0x1fc   :  { %v1088_v25 = vsel %vm1087_vm8, %v2781_v19, %v1084_v57  ;;  %v1092_v45 = vmul.f32 0.5, %v1091_v14  ;;  %v990_v23 = vmul.f32 %v1596_v17, %v2805_v6  ;;  %1599 = vrsqrt.f32 %v2856_v38 }
 0x1fd   :  { %1342 = vst.msk [vmem:[%s2982_s5 + $0x38] sm:$0xff] %vm361_vm1, %v1302_v10  ;;  %v1303_v26 = vadd.f32 %v2842_v32, %v1260_v43  ;;  %v1236_v1 = vmul.f32 %v1088_v25, %v2146_v44  ;;  %1601 = vrsqrt.f32 %v2862_v61  ;;  %v2880_v19 = vadd.f32 1e-06, %v766_v27 }
 0x1fe   :  { %v1093_v4 = vsub.f32 1.5, %v1092_v45  ;;  %v991_v5 = vmul.f32 %v1596_v17, %v990_v23  ;;  %v767_v21 = vmul.f32 %v725_v42, %v1936_v7  ;;  %v768_v44 = vmul.f32 %v728_v11, %v1936_v7 }
 0x1ff   :  { %v1598_v49 = vpop.eup %1597  ;;  %1343 = vst.msk [vmem:[%s2982_s5 + $0x40] sm:$0xff] %vm361_vm1, %v1303_v26  ;;  %v1279_v0 = vmul.f32 %v2821_v33, %v1236_v1  ;;  %vm1095_vm10 = vweird.f32 %v2776_v13  ;;  %vm996_vm12 = vweird.f32 %v1596_v17  ;;  %1603 = vrsqrt.f32 %v2880_v19 }
 0x200   :  { %v1094_v28 = vmul.f32 %v1594_v50, %v1093_v4  ;;  %v992_v8 = vmul.f32 0.5, %v991_v5  ;;  %v1000_v48 = vmul.f32 %v1598_v49, %v2835_v41  ;;  %vm1097_vm11 = vmor %vm1095_vm10, %vm1096_vm9  ;;  %v2888_v59 = vadd.f32 1e-06, %v767_v21 }
 0x201   :  { %v1322_v55 = vadd.f32 %v2842_v32, %v1279_v0  ;;  %v2890_v20 = vadd.f32 1e-06, %v768_v44  ;;  %vm995_vm13 = vweird.f32 %v2805_v6  ;;  %vm1006_vm15 = vweird.f32 %v1598_v49 }
 0x202   :  { %v1098_v62 = vsel %vm1097_vm11, %v1594_v50, %v1094_v28  ;;  %v993_v29 = vsub.f32 1.5, %v992_v8  ;;  %v1001_v46 = vmul.f32 %v1598_v49, %v1000_v48  ;;  %v1600_v7 = vpop.eup %1599  ;;  %1605 = vrsqrt.f32 %v2888_v59  ;;  %vm997_vm14 = vmor %vm995_vm13, %vm996_vm12 }
 0x203   :  { %1362 = vst.msk [vmem:[%s2982_s5 + $0xd8] sm:$0xff] %vm361_vm1, %v1322_v55  ;;  %v1237_v13 = vmul.f32 %v1098_v62, %v2168_v31  ;;  %v1602_v39 = vpop.eup %1601  ;;  %v1100_v24 = vmul.f32 %v1600_v7, %v2856_v38  ;;  %1607 = vrsqrt.f32 %v2890_v20  ;;  %vm1005_vm0 = vweird.f32 %v2835_v41 }
 0x204   :  { %v994_v35 = vmul.f32 %v1596_v17, %v993_v29  ;;  %v1002_v53 = vmul.f32 0.5, %v1001_v46  ;;  %v900_v22 = vmul.f32 %v1602_v39, %v2862_v61  ;;  %vm1105_vm2 = vweird.f32 %v2856_v38  ;;  %vm1007_vm3 = vmor %vm1005_vm0, %vm1006_vm15 }
 0x205   :  { %v1280_v47 = vmul.f32 %v2821_v33, %v1237_v13  ;;  %v1101_v31 = vmul.f32 %v1600_v7, %v1100_v24  ;;  %v1604_v54 = vpop.eup %1603  ;;  %vm1106_vm4 = vweird.f32 %v1600_v7  ;;  %vm905_vm5 = vweird.f32 %v2862_v61 }
 0x206   :  { %v998_v36 = vsel %vm997_vm14, %v1596_v17, %v994_v35  ;;  %v1003_v56 = vsub.f32 1.5, %v1002_v53  ;;  %v901_v50 = vmul.f32 %v1602_v39, %v900_v22  ;;  %v1180_v58 = vmul.f32 %v1604_v54, %v2880_v19  ;;  %vm1107_vm7 = vmor %vm1105_vm2, %vm1106_vm4 }
 0x207   :  { %v1323_v9 = vadd.f32 %v2842_v32, %v1280_v47  ;;  %v1227_v6 = vmul.f32 %v998_v36, %v2163_v16  ;;  %v1102_v51 = vmul.f32 0.5, %v1101_v31  ;;  %vm906_vm6 = vweird.f32 %v1602_v39 }
 0x208   :  { %v1004_v34 = vmul.f32 %v1598_v49, %v1003_v56  ;;  %v1606_v37 = vpop.eup %1605  ;;  %v902_v16 = vmul.f32 0.5, %v901_v50  ;;  %v1181_v15 = vmul.f32 %v1604_v54, %v1180_v58  ;;  %vm1185_vm8 = vweird.f32 %v2880_v19  ;;  %vm907_vm10 = vmor %vm905_vm5, %vm906_vm6 }
 0x209   :  { %1363 = vst.msk [vmem:[%s2982_s5 + $0xe0] sm:$0xff] %vm361_vm1, %v1323_v9  ;;  %v1270_v40 = vmul.f32 %v2821_v33, %v1227_v6  ;;  %v1103_v18 = vsub.f32 1.5, %v1102_v51  ;;  %v1190_v2 = vmul.f32 %v1606_v37, %v2888_v59  ;;  %v1608_v3 = vpop.eup %1607  ;;  %vm1186_vm9 = vweird.f32 %v1604_v54 }
 0x20a   :  { %v1008_v41 = vsel %vm1007_vm3, %v1598_v49, %v1004_v34  ;;  %v903_v14 = vsub.f32 1.5, %v902_v16  ;;  %v1182_v10 = vmul.f32 0.5, %v1181_v15  ;;  %v1200_v27 = vmul.f32 %v1608_v3, %v2890_v20  ;;  %vm1187_vm12 = vmor %vm1185_vm8, %vm1186_vm9 }
 0x20b   :  { %v1313_v52 = vadd.f32 %v2842_v32, %v1270_v40  ;;  %v1228_v57 = vmul.f32 %v1008_v41, %v2188_v30  ;;  %v1104_v17 = vmul.f32 %v1600_v7, %v1103_v18  ;;  %v1191_v43 = vmul.f32 %v1606_v37, %v1190_v2 }
 0x20c   :  { %v904_v45 = vmul.f32 %v1602_v39, %v903_v14  ;;  %v1183_v23 = vsub.f32 1.5, %v1182_v10  ;;  %v1201_v11 = vmul.f32 %v1608_v3, %v1200_v27  ;;  %vm1196_vm11 = vweird.f32 %v1606_v37 }
 0x20d   :  { %1353 = vst.msk [vmem:[%s2982_s5 + $0x90] sm:$0xff] %vm361_vm1, %v1313_v52  ;;  %v1271_v25 = vmul.f32 %v2821_v33, %v1228_v57  ;;  %v1108_v30 = vsel %vm1107_vm7, %v1600_v7, %v1104_v17  ;;  %v1192_v42 = vmul.f32 0.5, %v1191_v43  ;;  %vm1195_vm13 = vweird.f32 %v2888_v59  ;;  %v2987_v59 = vld [vmem:[#allocation2_spill] sm:$0xff]  ;;  %v2988_v7 = vld [vmem:[#allocation3_spill] sm:$0xff] }
 0x20e   :  { %v1238_v1 = vmul.f32 %v1108_v30, %v2185_v63  ;;  %v908_v4 = vsel %vm907_vm10, %v1602_v39, %v904_v45  ;;  %v1184_v5 = vmul.f32 %v1604_v54, %v1183_v23  ;;  %v1202_v0 = vmul.f32 0.5, %v1201_v11  ;;  %vm1197_vm15 = vmor %vm1195_vm13, %vm1196_vm11 }
 0x20f   :  { %v1314_v26 = vadd.f32 %v2842_v32, %v1271_v25  ;;  %v1218_v38 = vmul.f32 %v908_v4, %v2177_v60  ;;  %v1193_v49 = vsub.f32 1.5, %v1192_v42  ;;  %vm1206_vm14 = vweird.f32 %v1608_v3 }
 0x210   :  { %v1281_v61 = vmul.f32 %v2821_v33, %v1238_v1  ;;  %v1188_v60 = vsel %vm1187_vm12, %v1604_v54, %v1184_v5  ;;  %v1203_v44 = vsub.f32 1.5, %v1202_v0  ;;  %vm1205_vm0 = vweird.f32 %v2890_v20 }
 0x211   :  { %1354 = vst.msk [vmem:[%s2982_s5 + $0x98] sm:$0xff] %vm361_vm1, %v1314_v26  ;;  %v1261_v63 = vmul.f32 %v2821_v33, %v1218_v38  ;;  %v1194_v21 = vmul.f32 %v1606_v37, %v1193_v49  ;;  %v1246_v8 = vmul.f32 %v1188_v60, %v2198_v12  ;;  %vm1207_vm2 = vmor %vm1205_vm0, %vm1206_vm14 }
 0x212   :  { %v1324_v28 = vadd.f32 %v2842_v32, %v1281_v61  ;;  %v1204_v62 = vmul.f32 %v1608_v3, %v1203_v44 }
 0x213   :  { %v1304_v48 = vadd.f32 %v2842_v32, %v1261_v63  ;;  %v1198_v55 = vsel %vm1197_vm15, %v1606_v37, %v1194_v21  ;;  %v1289_v19 = vmul.f32 %v2821_v33, %v1246_v8 }
 0x214   :  { %1364 = vst.msk [vmem:[%s2982_s5 + $0xe8] sm:$0xff] %vm361_vm1, %v1324_v28  ;;  %v1247_v29 = vmul.f32 %v1198_v55, %v2987_v59  ;;  %v1208_v12 = vsel %vm1207_vm2, %v1608_v3, %v1204_v62 }
 0x215   :  { %1344 = vst.msk [vmem:[%s2982_s5 + $0x48] sm:$0xff] %vm361_vm1, %v1304_v48  ;;  %v1332_v46 = vadd.f32 %v2842_v32, %v1289_v19  ;;  %v1248_v13 = vmul.f32 %v1208_v12, %v2988_v7 }
 0x216   :  { %v1290_v20 = vmul.f32 %v2821_v33, %v1247_v29 }
 0x217   :  { %1372 = vst.msk [vmem:[%s2982_s5 + $0x128] sm:$0xff] %vm361_vm1, %v1332_v46  ;;  %v1291_v35 = vmul.f32 %v2821_v33, %v1248_v13 }
 0x218   :  { %v1333_v39 = vadd.f32 %v2842_v32, %v1290_v20 }
 0x219   :  { %v1334_v53 = vadd.f32 %v2842_v32, %v1291_v35 }
 0x21a   :  { %1373 = vst.msk [vmem:[%s2982_s5 + $0x130] sm:$0xff] %vm361_vm1, %v1333_v39 }
 0x21b   :  { %1374 = vst.msk [vmem:[%s2982_s5 + $0x138] sm:$0xff] %vm361_vm1, %v1334_v53 }

</bundles_post_ra>
